<compile_context>
chip_gen: v5e
topology: v5e:2x2
jax: 0.10.0
libtpu: 0.0.40
codegen_flags: <defaults>
</compile_context>

<pallas_src>
import jax
import jax.numpy as jnp
from jax import lax
from jax.experimental import pallas as pl
from jax.experimental.pallas import tpu as pltpu

HIDDEN = 8
FFN = 16
HEADS = 4
HEAD_DIM = HIDDEN // HEADS
GCN_LAYERS = 2
EGNN_LAYERS = 2
RET_LAYERS = 2
OUT_LAYERS = 3
VOCAB = 36
NEG_SLOPE = 0.01      # nn.LeakyReLU default
LN_EPS = 1e-5


# ------------------------------ fused kernel --------------------------------

def _layernorm(x, g, b):
    mu = jnp.mean(x, axis=-1, keepdims=True)
    var = jnp.mean((x - mu) ** 2, axis=-1, keepdims=True)
    return (x - mu) * lax.rsqrt(var + LN_EPS) * g + b


def _graph_stack(x, adj, w_ref, b_ref, n_layers):
    # relu((A @ X) @ W_l + b_l), layers statically unrolled
    for l in range(n_layers):
        ax = jnp.dot(adj, x, preferred_element_type=jnp.float32)
        h = jnp.dot(ax, w_ref[l], preferred_element_type=jnp.float32) + b_ref[l]
        x = jnp.maximum(h, 0.0)
    return x


def _retkcat_kernel(seq_ref, gx_ref, ex_ref, a_ref, e_ref, d_ref,
                    gcn_w_ref, gcn_b_ref, egn_w_ref, egn_b_ref,
                    wqkv_ref, wo_ref, w1_ref, w2_ref, vec_ref, head_ref,
                    o_ref):
    # ---- GCN / EGNNC branches -> pooled scalar features --------------------
    xg = _graph_stack(gx_ref[0], a_ref[0], gcn_w_ref, gcn_b_ref, GCN_LAYERS)
    xe = _graph_stack(ex_ref[0], e_ref[0], egn_w_ref, egn_b_ref, EGNN_LAYERS)
    # AvgPool1d(hidden) then sum over atoms  ==  sum(all elements) / hidden
    sn = jnp.sum(xg) * (1.0 / HIDDEN)
    se = jnp.sum(xe) * (1.0 / HIDDEN)

    # ---- RetNet branch ------------------------------------------------------
    x = seq_ref[0]                                      # (L, H)
    L = x.shape[0]
    for l in range(RET_LAYERS):
        vs = vec_ref[l]                                 # (8, FFN) packed slab
        g1, be1 = vs[0:1, :HIDDEN], vs[1:2, :HIDDEN]
        bf1 = vs[2:3, :]
        bf2 = vs[3:4, :HIDDEN]
        g2, be2 = vs[4:5, :HIDDEN], vs[5:6, :HIDDEN]
        wo_l = wo_ref[l]                                # (H, H)

        # fused q|k|v projection: one matmul instead of three
        qkv = jnp.dot(x, wqkv_ref[l], preferred_element_type=jnp.float32)  # (L,3H)

        # multi-head retention; W_o folded per head (no lane concat)
        ret = jnp.zeros((L, HIDDEN), jnp.float32)
        for h in range(HEADS):                          # static unroll
            lo, hi = h * HEAD_DIM, (h + 1) * HEAD_DIM
            qh = qkv[:, lo:hi]
            kh = qkv[:, HIDDEN + lo:HIDDEN + hi]
            vh = qkv[:, 2 * HIDDEN + lo:2 * HIDDEN + hi]
            s = lax.dot_general(qh, kh, (((1,), (1,)), ((), ())),
                                preferred_element_type=jnp.float32)
            s = s * d_ref[h]                            # (L, L) decay mask
            oh = jnp.dot(s, vh, preferred_element_type=jnp.float32)       # (L,hd)
            ret = ret + jnp.dot(oh, wo_l[lo:hi, :],
                                preferred_element_type=jnp.float32)       # (L,H)

        y = _layernorm(x + ret, g1, be1)
        f = jnp.dot(y, w1_ref[l], preferred_element_type=jnp.float32) + bf1
        f = jax.nn.gelu(f)
        f = jnp.dot(f, w2_ref[l], preferred_element_type=jnp.float32) + bf2
        x = _layernorm(y + f, g2, be2)

    xs_mean = jnp.mean(x, axis=-1, keepdims=True)       # (L, 1)  (avg-pool)

    # ---- head ---------------------------------------------------------------
    hw = head_ref[...]                                  # (8, 4) packed slab
    w_out = hw[0:2, 0:2]                                # last out-Linear W
    b_out = hw[2:3, 0:2]
    w_tr = hw[3:4, 0:2]                                 # trans W as a row
    b_tr = hw[4:5, 0:1]
    # concat([Xs*sn, Xs*se]) @ W_out == Xs outer (sn*W_out[0,:] + se*W_out[1,:])
    w_comb = sn * w_out[0:1, :] + se * w_out[1:2, :]    # (1, 2)
    h_pre = xs_mean * w_comb + b_out                    # (L, 2)
    h_act = jnp.where(h_pre > 0, h_pre, NEG_SLOPE * h_pre)      # LeakyReLU
    y = jnp.sum(h_act * w_tr, axis=-1, keepdims=True) + b_tr    # == trans(X)
    o_ref[...] = jnp.sum(y).reshape(1, 1, 1)


def _full_spec(shape):
    return pl.BlockSpec(shape, lambda b: (0,) * len(shape))


def retkcat_forward(packed, seq_x, gcn_x, egn_x, A, E, D):
    B, Ls, _ = seq_x.shape
    Na = gcn_x.shape[1]

    def per_sample(shape):
        return pl.BlockSpec(shape, lambda b: (b, 0, 0))

    in_specs = [
        per_sample((1, Ls, HIDDEN)),                 # seq embeddings
        per_sample((1, Na, HIDDEN)),                 # GCN mol embeddings
        per_sample((1, Na, HIDDEN)),                 # EGNNC mol embeddings
        per_sample((1, Na, Na)),                     # A
        per_sample((1, Na, Na)),                     # E
        _full_spec((HEADS, Ls, Ls)),                 # decay mask
        _full_spec((GCN_LAYERS, HIDDEN, HIDDEN)),
        _full_spec((GCN_LAYERS, 1, HIDDEN)),
        _full_spec((EGNN_LAYERS, HIDDEN, HIDDEN)),
        _full_spec((EGNN_LAYERS, 1, HIDDEN)),
        _full_spec((RET_LAYERS, HIDDEN, 3 * HIDDEN)),
        _full_spec((RET_LAYERS, HIDDEN, HIDDEN)),
        _full_spec((RET_LAYERS, HIDDEN, FFN)),
        _full_spec((RET_LAYERS, FFN, HIDDEN)),
        _full_spec((RET_LAYERS, 8, FFN)),
        _full_spec((8, 4)),
    ]

    out = pl.pallas_call(
        _retkcat_kernel,
        out_shape=jax.ShapeDtypeStruct((B, 1, 1), jnp.float32),
        grid_spec=pltpu.PrefetchScalarGridSpec(
            num_scalar_prefetch=0,
            grid=(B,),
            in_specs=in_specs,
            out_specs=pl.BlockSpec((1, 1, 1), lambda b: (b, 0, 0)),
        ),
        compiler_params=pltpu.CompilerParams(
            dimension_semantics=("parallel",)),
    )(seq_x, gcn_x, egn_x, A, E, D,
      packed['gcn_w'], packed['gcn_b'], packed['egn_w'], packed['egn_b'],
      packed['wqkv'], packed['wo'], packed['w1'], packed['w2'],
      packed['vec'], packed['head'])
    return out.reshape(B)


# ------------------------------ params & glue --------------------------------

def init_params(key):
    keys = iter(jax.random.split(key, 64))

    def nrm(shape, scale=0.1):
        return (scale * jax.random.normal(next(keys), shape)).astype(jnp.float32)

    return {
        'seq_ebd': nrm((VOCAB, HIDDEN)),
        'mol_ebd_GCN': nrm((VOCAB, HIDDEN)),
        'mol_ebd_EGNNC': nrm((VOCAB, HIDDEN)),
        'GCN': [{'W': nrm((HIDDEN, HIDDEN)), 'b': nrm((1, HIDDEN))}
                for _ in range(GCN_LAYERS)],
        'EGNNC': [{'W': nrm((HIDDEN, HIDDEN)), 'b': nrm((1, HIDDEN))}
                  for _ in range(EGNN_LAYERS)],
        'retnet': [{'wq': nrm((HIDDEN, HIDDEN)), 'wk': nrm((HIDDEN, HIDDEN)),
                    'wv': nrm((HIDDEN, HIDDEN)), 'wo': nrm((HIDDEN, HIDDEN)),
                    'g1': jnp.ones((1, HIDDEN), jnp.float32),
                    'be1': jnp.zeros((1, HIDDEN), jnp.float32),
                    'w1': nrm((HIDDEN, FFN)), 'bf1': nrm((1, FFN)),
                    'w2': nrm((FFN, HIDDEN)), 'bf2': nrm((1, HIDDEN)),
                    'g2': jnp.ones((1, HIDDEN), jnp.float32),
                    'be2': jnp.zeros((1, HIDDEN), jnp.float32)}
                   for _ in range(RET_LAYERS)],
        'out': [{'W': nrm((2, 2)), 'b': nrm((1, 2))} for _ in range(OUT_LAYERS)],
        'trans': {'W': nrm((2, 1)), 'b': nrm((1, 1))},
    }


def pack_params(p):
    """Stack per-layer weights and pack the small bias/LN vectors into slabs."""
    pad = FFN - HIDDEN

    def padh(v):
        return jnp.pad(v.reshape(-1), (0, pad))

    vec = []
    for lyr in p['retnet']:
        vec.append(jnp.stack([
            padh(lyr['g1']), padh(lyr['be1']), lyr['bf1'].reshape(-1),
            padh(lyr['bf2']), padh(lyr['g2']), padh(lyr['be2']),
            jnp.zeros((FFN,), jnp.float32), jnp.zeros((FFN,), jnp.float32)]))

    wout = p['out'][OUT_LAYERS - 1]        # only the last out-Linear affects X
    head = jnp.zeros((8, 4), jnp.float32)
    head = head.at[0:2, 0:2].set(wout['W'])
    head = head.at[2, 0:2].set(wout['b'].reshape(-1))
    head = head.at[3, 0:2].set(p['trans']['W'].reshape(-1))
    head = head.at[4, 0].set(p['trans']['b'].reshape(()))

    return {
        'gcn_w': jnp.stack([l['W'] for l in p['GCN']]),
        'gcn_b': jnp.stack([l['b'] for l in p['GCN']]),
        'egn_w': jnp.stack([l['W'] for l in p['EGNNC']]),
        'egn_b': jnp.stack([l['b'] for l in p['EGNNC']]),
        'wqkv': jnp.stack([jnp.concatenate([l['wq'], l['wk'], l['wv']], axis=-1)
                           for l in p['retnet']]),
        'wo': jnp.stack([l['wo'] for l in p['retnet']]),
        'w1': jnp.stack([l['w1'] for l in p['retnet']]),
        'w2': jnp.stack([l['w2'] for l in p['retnet']]),
        'vec': jnp.stack(vec),
        'head': head,
    }


def decay_mask(L):
    gammas = 1.0 - 2.0 ** (-5.0 - jnp.arange(HEADS, dtype=jnp.float32))
    n = jnp.arange(L, dtype=jnp.float32)[:, None]
    m = jnp.arange(L, dtype=jnp.float32)[None, :]
    diff = n - m
    return jnp.where(diff[None] >= 0,
                     gammas[:, None, None] ** diff[None],
                     0.0).astype(jnp.float32)


@jax.jit
def batched_forward(params, packed, seqs, mols, As, Es):
    seq_x = params['seq_ebd'][seqs]          # (B, Ls, H) embedding lookups
    gcn_x = params['mol_ebd_GCN'][mols]      # (B, Na, H)
    egn_x = params['mol_ebd_EGNNC'][mols]    # (B, Na, H)
    D = decay_mask(seqs.shape[1])            # computed once per shape
    return retkcat_forward(packed, seq_x, gcn_x, egn_x, As, Es, D)


def forward(params, packed, samples):
    """samples: list of (seq, mol, A, E), all padded to the same Ls / Na."""
    seqs = jnp.stack([s[0] for s in samples])
    mols = jnp.stack([s[1] for s in samples])
    As = jnp.stack([s[2] for s in samples])
    Es = jnp.stack([s[3] for s in samples])
    out = batched_forward(params, packed, seqs, mols, As, Es)   # (B,)
    return [out[b].reshape(1) for b in range(len(samples))]


# ----------------------------------- main ------------------------------------

if __name__ == "__main__":
    key = jax.random.PRNGKey(0)
    pkey, dkey = jax.random.split(key)
    params = init_params(pkey)
    packed = pack_params(params)

    Ls, Na = 16, 8   # sequence length, number of atoms (small demo shapes)

    def make_sample(k):
        ka, kb, kc, kd = jax.random.split(k, 4)
        seq = jax.random.randint(ka, (Ls,), 0, VOCAB)
        mol = jax.random.randint(kb, (Na,), 0, VOCAB)
        A = (jax.random.uniform(kc, (Na, Na)) > 0.5).astype(jnp.float32)
        A = jnp.maximum(A, A.T) + jnp.eye(Na, dtype=jnp.float32)
        E = jax.random.uniform(kd, (Na, Na), dtype=jnp.float32)
        return (seq, mol, A, E)

    k1, k2 = jax.random.split(dkey)
    samples = [make_sample(k1), make_sample(k2)]

    outs = forward(params, packed, samples)
    outs = [jax.block_until_ready(o) for o in outs]
    assert len(outs) == len(samples) and all(o.shape == (1,) for o in outs)
    assert all(bool(jnp.isfinite(o).all()) for o in outs)
    print("KERNEL_OK")
</pallas_src>

<mosaic_0001>
module attributes {stable_mosaic.version = 11 : i64} {
  func.func @_retkcat_kernel(%arg0: i32, %arg1: memref<1x16x8xf32, #tpu.memory_space<vmem>>, %arg2: memref<1x8x8xf32, #tpu.memory_space<vmem>>, %arg3: memref<1x8x8xf32, #tpu.memory_space<vmem>>, %arg4: memref<1x8x8xf32, #tpu.memory_space<vmem>>, %arg5: memref<1x8x8xf32, #tpu.memory_space<vmem>>, %arg6: memref<4x16x16xf32, #tpu.memory_space<vmem>>, %arg7: memref<2x8x8xf32, #tpu.memory_space<vmem>>, %arg8: memref<2x1x8xf32, #tpu.memory_space<vmem>>, %arg9: memref<2x8x8xf32, #tpu.memory_space<vmem>>, %arg10: memref<2x1x8xf32, #tpu.memory_space<vmem>>, %arg11: memref<2x8x24xf32, #tpu.memory_space<vmem>>, %arg12: memref<2x8x8xf32, #tpu.memory_space<vmem>>, %arg13: memref<2x8x16xf32, #tpu.memory_space<vmem>>, %arg14: memref<2x16x8xf32, #tpu.memory_space<vmem>>, %arg15: memref<2x8x16xf32, #tpu.memory_space<vmem>>, %arg16: memref<8x4xf32, #tpu.memory_space<vmem>>, %arg17: memref<1x1x1xf32, #tpu.memory_space<vmem>>) attributes {dimension_semantics = [#tpu.dimension_semantics<parallel>], iteration_bounds = array<i64: 2>, scalar_prefetch = 0 : i64, scratch_operands = 0 : i64, tpu.core_type = #tpu.core_type<tc>, window_params = [{transform_indices = @transform_0, window_bounds = array<i64: 1, 16, 8>}, {transform_indices = @transform_1, window_bounds = array<i64: 1, 8, 8>}, {transform_indices = @transform_2, window_bounds = array<i64: 1, 8, 8>}, {transform_indices = @transform_3, window_bounds = array<i64: 1, 8, 8>}, {transform_indices = @transform_4, window_bounds = array<i64: 1, 8, 8>}, {pipeline_mode = #tpu.pipeline_mode<synchronous>, transform_indices = @transform_5, window_bounds = array<i64: 4, 16, 16>}, {pipeline_mode = #tpu.pipeline_mode<synchronous>, transform_indices = @transform_6, window_bounds = array<i64: 2, 8, 8>}, {pipeline_mode = #tpu.pipeline_mode<synchronous>, transform_indices = @transform_7, window_bounds = array<i64: 2, 1, 8>}, {pipeline_mode = #tpu.pipeline_mode<synchronous>, transform_indices = @transform_8, window_bounds = array<i64: 2, 8, 8>}, {pipeline_mode = #tpu.pipeline_mode<synchronous>, transform_indices = @transform_9, window_bounds = array<i64: 2, 1, 8>}, {pipeline_mode = #tpu.pipeline_mode<synchronous>, transform_indices = @transform_10, window_bounds = array<i64: 2, 8, 24>}, {pipeline_mode = #tpu.pipeline_mode<synchronous>, transform_indices = @transform_11, window_bounds = array<i64: 2, 8, 8>}, {pipeline_mode = #tpu.pipeline_mode<synchronous>, transform_indices = @transform_12, window_bounds = array<i64: 2, 8, 16>}, {pipeline_mode = #tpu.pipeline_mode<synchronous>, transform_indices = @transform_13, window_bounds = array<i64: 2, 16, 8>}, {pipeline_mode = #tpu.pipeline_mode<synchronous>, transform_indices = @transform_14, window_bounds = array<i64: 2, 8, 16>}, {pipeline_mode = #tpu.pipeline_mode<synchronous>, transform_indices = @transform_15, window_bounds = array<i64: 8, 4>}, {transform_indices = @transform_16, window_bounds = array<i64: 1, 1, 1>}]} {
    %c0 = arith.constant 0 : index
    %c0_0 = arith.constant 0 : index
    %c0_1 = arith.constant 0 : index
    %0 = vector.load %arg2[%c0, %c0_0, %c0_1] : memref<1x8x8xf32, #tpu.memory_space<vmem>>, vector<1x8x8xf32>
    %1 = vector.shape_cast %0 : vector<1x8x8xf32> to vector<8x8xf32>
    %c0_2 = arith.constant 0 : index
    %c0_3 = arith.constant 0 : index
    %c0_4 = arith.constant 0 : index
    %2 = vector.load %arg4[%c0_2, %c0_3, %c0_4] : memref<1x8x8xf32, #tpu.memory_space<vmem>>, vector<1x8x8xf32>
    %3 = vector.shape_cast %2 : vector<1x8x8xf32> to vector<8x8xf32>
    %cst = arith.constant dense<0.000000e+00> : vector<8x8xf32>
    %4 = tpu.matmul %3, %1, %cst {dimension_numbers = #tpu.dot_dimension_numbers<[1], [0], [0], [1], [0, 0, 1, 1], [], []>} : vector<8x8xf32>, vector<8x8xf32>, vector<8x8xf32> -> vector<8x8xf32>
    %c0_5 = arith.constant 0 : index
    %c0_6 = arith.constant 0 : index
    %c0_7 = arith.constant 0 : index
    %5 = vector.load %arg7[%c0_5, %c0_6, %c0_7] : memref<2x8x8xf32, #tpu.memory_space<vmem>>, vector<1x8x8xf32>
    %6 = vector.shape_cast %5 : vector<1x8x8xf32> to vector<8x8xf32>
    %cst_8 = arith.constant dense<0.000000e+00> : vector<8x8xf32>
    %7 = tpu.matmul %4, %6, %cst_8 {dimension_numbers = #tpu.dot_dimension_numbers<[1], [0], [0], [1], [0, 0, 1, 1], [], []>} : vector<8x8xf32>, vector<8x8xf32>, vector<8x8xf32> -> vector<8x8xf32>
    %c0_9 = arith.constant 0 : index
    %c0_10 = arith.constant 0 : index
    %c0_11 = arith.constant 0 : index
    %8 = vector.load %arg8[%c0_9, %c0_10, %c0_11] : memref<2x1x8xf32, #tpu.memory_space<vmem>>, vector<1x1x8xf32>
    %9 = vector.shape_cast %8 : vector<1x1x8xf32> to vector<1x8xf32>
    %10 = vector.broadcast %9 : vector<1x8xf32> to vector<8x8xf32>
    %11 = arith.addf %7, %10 : vector<8x8xf32>
    %cst_12 = arith.constant 0.000000e+00 : f32
    %12 = vector.broadcast %cst_12 : f32 to vector<8x8xf32>
    %13 = arith.maximumf %11, %12 : vector<8x8xf32>
    %cst_13 = arith.constant dense<0.000000e+00> : vector<8x8xf32>
    %14 = tpu.matmul %3, %13, %cst_13 {dimension_numbers = #tpu.dot_dimension_numbers<[1], [0], [0], [1], [0, 0, 1, 1], [], []>} : vector<8x8xf32>, vector<8x8xf32>, vector<8x8xf32> -> vector<8x8xf32>
    %c1 = arith.constant 1 : index
    %c0_14 = arith.constant 0 : index
    %c0_15 = arith.constant 0 : index
    %15 = vector.load %arg7[%c1, %c0_14, %c0_15] : memref<2x8x8xf32, #tpu.memory_space<vmem>>, vector<1x8x8xf32>
    %16 = vector.shape_cast %15 : vector<1x8x8xf32> to vector<8x8xf32>
    %cst_16 = arith.constant dense<0.000000e+00> : vector<8x8xf32>
    %17 = tpu.matmul %14, %16, %cst_16 {dimension_numbers = #tpu.dot_dimension_numbers<[1], [0], [0], [1], [0, 0, 1, 1], [], []>} : vector<8x8xf32>, vector<8x8xf32>, vector<8x8xf32> -> vector<8x8xf32>
    %c1_17 = arith.constant 1 : index
    %c0_18 = arith.constant 0 : index
    %c0_19 = arith.constant 0 : index
    %18 = vector.load %arg8[%c1_17, %c0_18, %c0_19] : memref<2x1x8xf32, #tpu.memory_space<vmem>>, vector<1x1x8xf32>
    %19 = vector.shape_cast %18 : vector<1x1x8xf32> to vector<1x8xf32>
    %20 = vector.broadcast %19 : vector<1x8xf32> to vector<8x8xf32>
    %21 = arith.addf %17, %20 : vector<8x8xf32>
    %cst_20 = arith.constant 0.000000e+00 : f32
    %22 = vector.broadcast %cst_20 : f32 to vector<8x8xf32>
    %23 = arith.maximumf %21, %22 : vector<8x8xf32>
    %c0_21 = arith.constant 0 : index
    %c0_22 = arith.constant 0 : index
    %c0_23 = arith.constant 0 : index
    %24 = vector.load %arg3[%c0_21, %c0_22, %c0_23] : memref<1x8x8xf32, #tpu.memory_space<vmem>>, vector<1x8x8xf32>
    %25 = vector.shape_cast %24 : vector<1x8x8xf32> to vector<8x8xf32>
    %c0_24 = arith.constant 0 : index
    %c0_25 = arith.constant 0 : index
    %c0_26 = arith.constant 0 : index
    %26 = vector.load %arg5[%c0_24, %c0_25, %c0_26] : memref<1x8x8xf32, #tpu.memory_space<vmem>>, vector<1x8x8xf32>
    %27 = vector.shape_cast %26 : vector<1x8x8xf32> to vector<8x8xf32>
    %cst_27 = arith.constant dense<0.000000e+00> : vector<8x8xf32>
    %28 = tpu.matmul %27, %25, %cst_27 {dimension_numbers = #tpu.dot_dimension_numbers<[1], [0], [0], [1], [0, 0, 1, 1], [], []>} : vector<8x8xf32>, vector<8x8xf32>, vector<8x8xf32> -> vector<8x8xf32>
    %c0_28 = arith.constant 0 : index
    %c0_29 = arith.constant 0 : index
    %c0_30 = arith.constant 0 : index
    %29 = vector.load %arg9[%c0_28, %c0_29, %c0_30] : memref<2x8x8xf32, #tpu.memory_space<vmem>>, vector<1x8x8xf32>
    %30 = vector.shape_cast %29 : vector<1x8x8xf32> to vector<8x8xf32>
    %cst_31 = arith.constant dense<0.000000e+00> : vector<8x8xf32>
    %31 = tpu.matmul %28, %30, %cst_31 {dimension_numbers = #tpu.dot_dimension_numbers<[1], [0], [0], [1], [0, 0, 1, 1], [], []>} : vector<8x8xf32>, vector<8x8xf32>, vector<8x8xf32> -> vector<8x8xf32>
    %c0_32 = arith.constant 0 : index
    %c0_33 = arith.constant 0 : index
    %c0_34 = arith.constant 0 : index
    %32 = vector.load %arg10[%c0_32, %c0_33, %c0_34] : memref<2x1x8xf32, #tpu.memory_space<vmem>>, vector<1x1x8xf32>
    %33 = vector.shape_cast %32 : vector<1x1x8xf32> to vector<1x8xf32>
    %34 = vector.broadcast %33 : vector<1x8xf32> to vector<8x8xf32>
    %35 = arith.addf %31, %34 : vector<8x8xf32>
    %cst_35 = arith.constant 0.000000e+00 : f32
    %36 = vector.broadcast %cst_35 : f32 to vector<8x8xf32>
    %37 = arith.maximumf %35, %36 : vector<8x8xf32>
    %cst_36 = arith.constant dense<0.000000e+00> : vector<8x8xf32>
    %38 = tpu.matmul %27, %37, %cst_36 {dimension_numbers = #tpu.dot_dimension_numbers<[1], [0], [0], [1], [0, 0, 1, 1], [], []>} : vector<8x8xf32>, vector<8x8xf32>, vector<8x8xf32> -> vector<8x8xf32>
    %c1_37 = arith.constant 1 : index
    %c0_38 = arith.constant 0 : index
    %c0_39 = arith.constant 0 : index
    %39 = vector.load %arg9[%c1_37, %c0_38, %c0_39] : memref<2x8x8xf32, #tpu.memory_space<vmem>>, vector<1x8x8xf32>
    %40 = vector.shape_cast %39 : vector<1x8x8xf32> to vector<8x8xf32>
    %cst_40 = arith.constant dense<0.000000e+00> : vector<8x8xf32>
    %41 = tpu.matmul %38, %40, %cst_40 {dimension_numbers = #tpu.dot_dimension_numbers<[1], [0], [0], [1], [0, 0, 1, 1], [], []>} : vector<8x8xf32>, vector<8x8xf32>, vector<8x8xf32> -> vector<8x8xf32>
    %c1_41 = arith.constant 1 : index
    %c0_42 = arith.constant 0 : index
    %c0_43 = arith.constant 0 : index
    %42 = vector.load %arg10[%c1_41, %c0_42, %c0_43] : memref<2x1x8xf32, #tpu.memory_space<vmem>>, vector<1x1x8xf32>
    %43 = vector.shape_cast %42 : vector<1x1x8xf32> to vector<1x8xf32>
    %44 = vector.broadcast %43 : vector<1x8xf32> to vector<8x8xf32>
    %45 = arith.addf %41, %44 : vector<8x8xf32>
    %cst_44 = arith.constant 0.000000e+00 : f32
    %46 = vector.broadcast %cst_44 : f32 to vector<8x8xf32>
    %47 = arith.maximumf %45, %46 : vector<8x8xf32>
    %48 = vector.shape_cast %23 : vector<8x8xf32> to vector<1x8x8xf32>
    %cst_45 = arith.constant dense<0.000000e+00> : vector<1xf32>
    %49 = vector.multi_reduction <add>, %48, %cst_45 [1, 2] : vector<1x8x8xf32> to vector<1xf32>
    %50 = vector.shape_cast %49 : vector<1xf32> to vector<1x1x1xf32>
    %51 = vector.extract %50[0, 0, 0] : f32 from vector<1x1x1xf32>
    %cst_46 = arith.constant 1.250000e-01 : f32
    %52 = arith.mulf %51, %cst_46 : f32
    %53 = vector.shape_cast %47 : vector<8x8xf32> to vector<1x8x8xf32>
    %cst_47 = arith.constant dense<0.000000e+00> : vector<1xf32>
    %54 = vector.multi_reduction <add>, %53, %cst_47 [1, 2] : vector<1x8x8xf32> to vector<1xf32>
    %55 = vector.shape_cast %54 : vector<1xf32> to vector<1x1x1xf32>
    %56 = vector.extract %55[0, 0, 0] : f32 from vector<1x1x1xf32>
    %cst_48 = arith.constant 1.250000e-01 : f32
    %57 = arith.mulf %56, %cst_48 : f32
    %c0_49 = arith.constant 0 : index
    %c0_50 = arith.constant 0 : index
    %c0_51 = arith.constant 0 : index
    %58 = vector.load %arg1[%c0_49, %c0_50, %c0_51] : memref<1x16x8xf32, #tpu.memory_space<vmem>>, vector<1x16x8xf32>
    %59 = vector.shape_cast %58 : vector<1x16x8xf32> to vector<16x8xf32>
    %c0_52 = arith.constant 0 : index
    %c0_53 = arith.constant 0 : index
    %c0_54 = arith.constant 0 : index
    %60 = vector.load %arg15[%c0_52, %c0_53, %c0_54] : memref<2x8x16xf32, #tpu.memory_space<vmem>>, vector<1x8x16xf32>
    %61 = vector.shape_cast %60 : vector<1x8x16xf32> to vector<8x16xf32>
    %62 = vector.extract_strided_slice %61 {offsets = [0, 0], sizes = [1, 8], strides = [1, 1]} : vector<8x16xf32> to vector<1x8xf32>
    %63 = vector.extract_strided_slice %61 {offsets = [1, 0], sizes = [1, 8], strides = [1, 1]} : vector<8x16xf32> to vector<1x8xf32>
    %64 = vector.extract_strided_slice %61 {offsets = [2, 0], sizes = [1, 16], strides = [1, 1]} : vector<8x16xf32> to vector<1x16xf32>
    %65 = vector.extract_strided_slice %61 {offsets = [3, 0], sizes = [1, 8], strides = [1, 1]} : vector<8x16xf32> to vector<1x8xf32>
    %66 = vector.extract_strided_slice %61 {offsets = [4, 0], sizes = [1, 8], strides = [1, 1]} : vector<8x16xf32> to vector<1x8xf32>
    %67 = vector.extract_strided_slice %61 {offsets = [5, 0], sizes = [1, 8], strides = [1, 1]} : vector<8x16xf32> to vector<1x8xf32>
    %c0_55 = arith.constant 0 : index
    %c0_56 = arith.constant 0 : index
    %c0_57 = arith.constant 0 : index
    %68 = vector.load %arg12[%c0_55, %c0_56, %c0_57] : memref<2x8x8xf32, #tpu.memory_space<vmem>>, vector<1x8x8xf32>
    %69 = vector.shape_cast %68 : vector<1x8x8xf32> to vector<8x8xf32>
    %c0_58 = arith.constant 0 : index
    %c0_59 = arith.constant 0 : index
    %c0_60 = arith.constant 0 : index
    %70 = vector.load %arg11[%c0_58, %c0_59, %c0_60] : memref<2x8x24xf32, #tpu.memory_space<vmem>>, vector<1x8x24xf32>
    %71 = vector.shape_cast %70 : vector<1x8x24xf32> to vector<8x24xf32>
    %cst_61 = arith.constant dense<0.000000e+00> : vector<16x24xf32>
    %72 = tpu.matmul %59, %71, %cst_61 {dimension_numbers = #tpu.dot_dimension_numbers<[1], [0], [0], [1], [0, 0, 1, 1], [], []>} : vector<16x8xf32>, vector<8x24xf32>, vector<16x24xf32> -> vector<16x24xf32>
    %cst_62 = arith.constant 0.000000e+00 : f32
    %73 = vector.broadcast %cst_62 : f32 to vector<16x8xf32>
    %74 = vector.extract_strided_slice %72 {offsets = [0, 0], sizes = [16, 2], strides = [1, 1]} : vector<16x24xf32> to vector<16x2xf32>
    %75 = vector.extract_strided_slice %72 {offsets = [0, 8], sizes = [16, 2], strides = [1, 1]} : vector<16x24xf32> to vector<16x2xf32>
    %76 = vector.extract_strided_slice %72 {offsets = [0, 16], sizes = [16, 2], strides = [1, 1]} : vector<16x24xf32> to vector<16x2xf32>
    %cst_63 = arith.constant dense<0.000000e+00> : vector<16x16xf32>
    %77 = tpu.matmul %74, %75, %cst_63 {dimension_numbers = #tpu.dot_dimension_numbers<[1], [1], [0], [0], [0, 0, 1, 0], [], []>} : vector<16x2xf32>, vector<16x2xf32>, vector<16x16xf32> -> vector<16x16xf32>
    %c0_64 = arith.constant 0 : index
    %c0_65 = arith.constant 0 : index
    %c0_66 = arith.constant 0 : index
    %78 = vector.load %arg6[%c0_64, %c0_65, %c0_66] : memref<4x16x16xf32, #tpu.memory_space<vmem>>, vector<1x16x16xf32>
    %79 = vector.shape_cast %78 : vector<1x16x16xf32> to vector<16x16xf32>
    %80 = arith.mulf %77, %79 : vector<16x16xf32>
    %cst_67 = arith.constant dense<0.000000e+00> : vector<16x2xf32>
    %81 = tpu.matmul %80, %76, %cst_67 {dimension_numbers = #tpu.dot_dimension_numbers<[1], [0], [0], [1], [0, 0, 1, 1], [], []>} : vector<16x16xf32>, vector<16x2xf32>, vector<16x2xf32> -> vector<16x2xf32>
    %82 = vector.extract_strided_slice %69 {offsets = [0, 0], sizes = [2, 8], strides = [1, 1]} : vector<8x8xf32> to vector<2x8xf32>
    %cst_68 = arith.constant dense<0.000000e+00> : vector<16x8xf32>
    %83 = tpu.matmul %81, %82, %cst_68 {dimension_numbers = #tpu.dot_dimension_numbers<[1], [0], [0], [1], [0, 0, 1, 1], [], []>} : vector<16x2xf32>, vector<2x8xf32>, vector<16x8xf32> -> vector<16x8xf32>
    %84 = arith.addf %73, %83 : vector<16x8xf32>
    %85 = vector.extract_strided_slice %72 {offsets = [0, 2], sizes = [16, 2], strides = [1, 1]} : vector<16x24xf32> to vector<16x2xf32>
    %86 = vector.extract_strided_slice %72 {offsets = [0, 10], sizes = [16, 2], strides = [1, 1]} : vector<16x24xf32> to vector<16x2xf32>
    %87 = vector.extract_strided_slice %72 {offsets = [0, 18], sizes = [16, 2], strides = [1, 1]} : vector<16x24xf32> to vector<16x2xf32>
    %cst_69 = arith.constant dense<0.000000e+00> : vector<16x16xf32>
    %88 = tpu.matmul %85, %86, %cst_69 {dimension_numbers = #tpu.dot_dimension_numbers<[1], [1], [0], [0], [0, 0, 1, 0], [], []>} : vector<16x2xf32>, vector<16x2xf32>, vector<16x16xf32> -> vector<16x16xf32>
    %c1_70 = arith.constant 1 : index
    %c0_71 = arith.constant 0 : index
    %c0_72 = arith.constant 0 : index
    %89 = vector.load %arg6[%c1_70, %c0_71, %c0_72] : memref<4x16x16xf32, #tpu.memory_space<vmem>>, vector<1x16x16xf32>
    %90 = vector.shape_cast %89 : vector<1x16x16xf32> to vector<16x16xf32>
    %91 = arith.mulf %88, %90 : vector<16x16xf32>
    %cst_73 = arith.constant dense<0.000000e+00> : vector<16x2xf32>
    %92 = tpu.matmul %91, %87, %cst_73 {dimension_numbers = #tpu.dot_dimension_numbers<[1], [0], [0], [1], [0, 0, 1, 1], [], []>} : vector<16x16xf32>, vector<16x2xf32>, vector<16x2xf32> -> vector<16x2xf32>
    %93 = vector.extract_strided_slice %69 {offsets = [2, 0], sizes = [2, 8], strides = [1, 1]} : vector<8x8xf32> to vector<2x8xf32>
    %cst_74 = arith.constant dense<0.000000e+00> : vector<16x8xf32>
    %94 = tpu.matmul %92, %93, %cst_74 {dimension_numbers = #tpu.dot_dimension_numbers<[1], [0], [0], [1], [0, 0, 1, 1], [], []>} : vector<16x2xf32>, vector<2x8xf32>, vector<16x8xf32> -> vector<16x8xf32>
    %95 = arith.addf %84, %94 : vector<16x8xf32>
    %96 = vector.extract_strided_slice %72 {offsets = [0, 4], sizes = [16, 2], strides = [1, 1]} : vector<16x24xf32> to vector<16x2xf32>
    %97 = vector.extract_strided_slice %72 {offsets = [0, 12], sizes = [16, 2], strides = [1, 1]} : vector<16x24xf32> to vector<16x2xf32>
    %98 = vector.extract_strided_slice %72 {offsets = [0, 20], sizes = [16, 2], strides = [1, 1]} : vector<16x24xf32> to vector<16x2xf32>
    %cst_75 = arith.constant dense<0.000000e+00> : vector<16x16xf32>
    %99 = tpu.matmul %96, %97, %cst_75 {dimension_numbers = #tpu.dot_dimension_numbers<[1], [1], [0], [0], [0, 0, 1, 0], [], []>} : vector<16x2xf32>, vector<16x2xf32>, vector<16x16xf32> -> vector<16x16xf32>
    %c2 = arith.constant 2 : index
    %c0_76 = arith.constant 0 : index
    %c0_77 = arith.constant 0 : index
    %100 = vector.load %arg6[%c2, %c0_76, %c0_77] : memref<4x16x16xf32, #tpu.memory_space<vmem>>, vector<1x16x16xf32>
    %101 = vector.shape_cast %100 : vector<1x16x16xf32> to vector<16x16xf32>
    %102 = arith.mulf %99, %101 : vector<16x16xf32>
    %cst_78 = arith.constant dense<0.000000e+00> : vector<16x2xf32>
    %103 = tpu.matmul %102, %98, %cst_78 {dimension_numbers = #tpu.dot_dimension_numbers<[1], [0], [0], [1], [0, 0, 1, 1], [], []>} : vector<16x16xf32>, vector<16x2xf32>, vector<16x2xf32> -> vector<16x2xf32>
    %104 = vector.extract_strided_slice %69 {offsets = [4, 0], sizes = [2, 8], strides = [1, 1]} : vector<8x8xf32> to vector<2x8xf32>
    %cst_79 = arith.constant dense<0.000000e+00> : vector<16x8xf32>
    %105 = tpu.matmul %103, %104, %cst_79 {dimension_numbers = #tpu.dot_dimension_numbers<[1], [0], [0], [1], [0, 0, 1, 1], [], []>} : vector<16x2xf32>, vector<2x8xf32>, vector<16x8xf32> -> vector<16x8xf32>
    %106 = arith.addf %95, %105 : vector<16x8xf32>
    %107 = vector.extract_strided_slice %72 {offsets = [0, 6], sizes = [16, 2], strides = [1, 1]} : vector<16x24xf32> to vector<16x2xf32>
    %108 = vector.extract_strided_slice %72 {offsets = [0, 14], sizes = [16, 2], strides = [1, 1]} : vector<16x24xf32> to vector<16x2xf32>
    %109 = vector.extract_strided_slice %72 {offsets = [0, 22], sizes = [16, 2], strides = [1, 1]} : vector<16x24xf32> to vector<16x2xf32>
    %cst_80 = arith.constant dense<0.000000e+00> : vector<16x16xf32>
    %110 = tpu.matmul %107, %108, %cst_80 {dimension_numbers = #tpu.dot_dimension_numbers<[1], [1], [0], [0], [0, 0, 1, 0], [], []>} : vector<16x2xf32>, vector<16x2xf32>, vector<16x16xf32> -> vector<16x16xf32>
    %c3 = arith.constant 3 : index
    %c0_81 = arith.constant 0 : index
    %c0_82 = arith.constant 0 : index
    %111 = vector.load %arg6[%c3, %c0_81, %c0_82] : memref<4x16x16xf32, #tpu.memory_space<vmem>>, vector<1x16x16xf32>
    %112 = vector.shape_cast %111 : vector<1x16x16xf32> to vector<16x16xf32>
    %113 = arith.mulf %110, %112 : vector<16x16xf32>
    %cst_83 = arith.constant dense<0.000000e+00> : vector<16x2xf32>
    %114 = tpu.matmul %113, %109, %cst_83 {dimension_numbers = #tpu.dot_dimension_numbers<[1], [0], [0], [1], [0, 0, 1, 1], [], []>} : vector<16x16xf32>, vector<16x2xf32>, vector<16x2xf32> -> vector<16x2xf32>
    %115 = vector.extract_strided_slice %69 {offsets = [6, 0], sizes = [2, 8], strides = [1, 1]} : vector<8x8xf32> to vector<2x8xf32>
    %cst_84 = arith.constant dense<0.000000e+00> : vector<16x8xf32>
    %116 = tpu.matmul %114, %115, %cst_84 {dimension_numbers = #tpu.dot_dimension_numbers<[1], [0], [0], [1], [0, 0, 1, 1], [], []>} : vector<16x2xf32>, vector<2x8xf32>, vector<16x8xf32> -> vector<16x8xf32>
    %117 = arith.addf %106, %116 : vector<16x8xf32>
    %118 = arith.addf %59, %117 : vector<16x8xf32>
    %cst_85 = arith.constant dense<0.000000e+00> : vector<16xf32>
    %119 = vector.multi_reduction <add>, %118, %cst_85 [1] : vector<16x8xf32> to vector<16xf32>
    %120 = vector.shape_cast %119 : vector<16xf32> to vector<16x1xf32>
    %cst_86 = arith.constant 8.000000e+00 : f32
    %121 = vector.broadcast %cst_86 : f32 to vector<16x1xf32>
    %122 = arith.divf %120, %121 : vector<16x1xf32>
    %123 = vector.broadcast %122 : vector<16x1xf32> to vector<16x8xf32>
    %124 = arith.subf %118, %123 : vector<16x8xf32>
    %125 = arith.mulf %124, %124 : vector<16x8xf32>
    %cst_87 = arith.constant dense<0.000000e+00> : vector<16xf32>
    %126 = vector.multi_reduction <add>, %125, %cst_87 [1] : vector<16x8xf32> to vector<16xf32>
    %127 = vector.shape_cast %126 : vector<16xf32> to vector<16x1xf32>
    %cst_88 = arith.constant 8.000000e+00 : f32
    %128 = vector.broadcast %cst_88 : f32 to vector<16x1xf32>
    %129 = arith.divf %127, %128 : vector<16x1xf32>
    %130 = vector.broadcast %122 : vector<16x1xf32> to vector<16x8xf32>
    %131 = arith.subf %118, %130 : vector<16x8xf32>
    %cst_89 = arith.constant 9.99999974E-6 : f32
    %132 = vector.broadcast %cst_89 : f32 to vector<16x1xf32>
    %133 = arith.addf %129, %132 : vector<16x1xf32>
    %134 = math.rsqrt %133 : vector<16x1xf32>
    %135 = vector.broadcast %134 : vector<16x1xf32> to vector<16x8xf32>
    %136 = arith.mulf %131, %135 : vector<16x8xf32>
    %137 = vector.broadcast %62 : vector<1x8xf32> to vector<16x8xf32>
    %138 = arith.mulf %136, %137 : vector<16x8xf32>
    %139 = vector.broadcast %63 : vector<1x8xf32> to vector<16x8xf32>
    %140 = arith.addf %138, %139 : vector<16x8xf32>
    %c0_90 = arith.constant 0 : index
    %c0_91 = arith.constant 0 : index
    %c0_92 = arith.constant 0 : index
    %141 = vector.load %arg13[%c0_90, %c0_91, %c0_92] : memref<2x8x16xf32, #tpu.memory_space<vmem>>, vector<1x8x16xf32>
    %142 = vector.shape_cast %141 : vector<1x8x16xf32> to vector<8x16xf32>
    %cst_93 = arith.constant dense<0.000000e+00> : vector<16x16xf32>
    %143 = tpu.matmul %140, %142, %cst_93 {dimension_numbers = #tpu.dot_dimension_numbers<[1], [0], [0], [1], [0, 0, 1, 1], [], []>} : vector<16x8xf32>, vector<8x16xf32>, vector<16x16xf32> -> vector<16x16xf32>
    %144 = vector.broadcast %64 : vector<1x16xf32> to vector<16x16xf32>
    %145 = arith.addf %143, %144 : vector<16x16xf32>
    %146 = arith.mulf %145, %145 : vector<16x16xf32>
    %147 = arith.mulf %145, %146 : vector<16x16xf32>
    %cst_94 = arith.constant 4.471500e-02 : f32
    %148 = vector.broadcast %cst_94 : f32 to vector<16x16xf32>
    %149 = arith.mulf %148, %147 : vector<16x16xf32>
    %150 = arith.addf %145, %149 : vector<16x16xf32>
    %cst_95 = arith.constant 0.797884583 : f32
    %151 = vector.broadcast %cst_95 : f32 to vector<16x16xf32>
    %152 = arith.mulf %151, %150 : vector<16x16xf32>
    %153 = math.tanh %152 : vector<16x16xf32>
    %cst_96 = arith.constant 1.000000e+00 : f32
    %154 = vector.broadcast %cst_96 : f32 to vector<16x16xf32>
    %155 = arith.addf %154, %153 : vector<16x16xf32>
    %cst_97 = arith.constant 5.000000e-01 : f32
    %156 = vector.broadcast %cst_97 : f32 to vector<16x16xf32>
    %157 = arith.mulf %156, %155 : vector<16x16xf32>
    %158 = arith.mulf %145, %157 : vector<16x16xf32>
    %c0_98 = arith.constant 0 : index
    %c0_99 = arith.constant 0 : index
    %c0_100 = arith.constant 0 : index
    %159 = vector.load %arg14[%c0_98, %c0_99, %c0_100] : memref<2x16x8xf32, #tpu.memory_space<vmem>>, vector<1x16x8xf32>
    %160 = vector.shape_cast %159 : vector<1x16x8xf32> to vector<16x8xf32>
    %cst_101 = arith.constant dense<0.000000e+00> : vector<16x8xf32>
    %161 = tpu.matmul %158, %160, %cst_101 {dimension_numbers = #tpu.dot_dimension_numbers<[1], [0], [0], [1], [0, 0, 1, 1], [], []>} : vector<16x16xf32>, vector<16x8xf32>, vector<16x8xf32> -> vector<16x8xf32>
    %162 = vector.broadcast %65 : vector<1x8xf32> to vector<16x8xf32>
    %163 = arith.addf %161, %162 : vector<16x8xf32>
    %164 = arith.addf %140, %163 : vector<16x8xf32>
    %cst_102 = arith.constant dense<0.000000e+00> : vector<16xf32>
    %165 = vector.multi_reduction <add>, %164, %cst_102 [1] : vector<16x8xf32> to vector<16xf32>
    %166 = vector.shape_cast %165 : vector<16xf32> to vector<16x1xf32>
    %cst_103 = arith.constant 8.000000e+00 : f32
    %167 = vector.broadcast %cst_103 : f32 to vector<16x1xf32>
    %168 = arith.divf %166, %167 : vector<16x1xf32>
    %169 = vector.broadcast %168 : vector<16x1xf32> to vector<16x8xf32>
    %170 = arith.subf %164, %169 : vector<16x8xf32>
    %171 = arith.mulf %170, %170 : vector<16x8xf32>
    %cst_104 = arith.constant dense<0.000000e+00> : vector<16xf32>
    %172 = vector.multi_reduction <add>, %171, %cst_104 [1] : vector<16x8xf32> to vector<16xf32>
    %173 = vector.shape_cast %172 : vector<16xf32> to vector<16x1xf32>
    %cst_105 = arith.constant 8.000000e+00 : f32
    %174 = vector.broadcast %cst_105 : f32 to vector<16x1xf32>
    %175 = arith.divf %173, %174 : vector<16x1xf32>
    %176 = vector.broadcast %168 : vector<16x1xf32> to vector<16x8xf32>
    %177 = arith.subf %164, %176 : vector<16x8xf32>
    %cst_106 = arith.constant 9.99999974E-6 : f32
    %178 = vector.broadcast %cst_106 : f32 to vector<16x1xf32>
    %179 = arith.addf %175, %178 : vector<16x1xf32>
    %180 = math.rsqrt %179 : vector<16x1xf32>
    %181 = vector.broadcast %180 : vector<16x1xf32> to vector<16x8xf32>
    %182 = arith.mulf %177, %181 : vector<16x8xf32>
    %183 = vector.broadcast %66 : vector<1x8xf32> to vector<16x8xf32>
    %184 = arith.mulf %182, %183 : vector<16x8xf32>
    %185 = vector.broadcast %67 : vector<1x8xf32> to vector<16x8xf32>
    %186 = arith.addf %184, %185 : vector<16x8xf32>
    %c1_107 = arith.constant 1 : index
    %c0_108 = arith.constant 0 : index
    %c0_109 = arith.constant 0 : index
    %187 = vector.load %arg15[%c1_107, %c0_108, %c0_109] : memref<2x8x16xf32, #tpu.memory_space<vmem>>, vector<1x8x16xf32>
    %188 = vector.shape_cast %187 : vector<1x8x16xf32> to vector<8x16xf32>
    %189 = vector.extract_strided_slice %188 {offsets = [0, 0], sizes = [1, 8], strides = [1, 1]} : vector<8x16xf32> to vector<1x8xf32>
    %190 = vector.extract_strided_slice %188 {offsets = [1, 0], sizes = [1, 8], strides = [1, 1]} : vector<8x16xf32> to vector<1x8xf32>
    %191 = vector.extract_strided_slice %188 {offsets = [2, 0], sizes = [1, 16], strides = [1, 1]} : vector<8x16xf32> to vector<1x16xf32>
    %192 = vector.extract_strided_slice %188 {offsets = [3, 0], sizes = [1, 8], strides = [1, 1]} : vector<8x16xf32> to vector<1x8xf32>
    %193 = vector.extract_strided_slice %188 {offsets = [4, 0], sizes = [1, 8], strides = [1, 1]} : vector<8x16xf32> to vector<1x8xf32>
    %194 = vector.extract_strided_slice %188 {offsets = [5, 0], sizes = [1, 8], strides = [1, 1]} : vector<8x16xf32> to vector<1x8xf32>
    %c1_110 = arith.constant 1 : index
    %c0_111 = arith.constant 0 : index
    %c0_112 = arith.constant 0 : index
    %195 = vector.load %arg12[%c1_110, %c0_111, %c0_112] : memref<2x8x8xf32, #tpu.memory_space<vmem>>, vector<1x8x8xf32>
    %196 = vector.shape_cast %195 : vector<1x8x8xf32> to vector<8x8xf32>
    %c1_113 = arith.constant 1 : index
    %c0_114 = arith.constant 0 : index
    %c0_115 = arith.constant 0 : index
    %197 = vector.load %arg11[%c1_113, %c0_114, %c0_115] : memref<2x8x24xf32, #tpu.memory_space<vmem>>, vector<1x8x24xf32>
    %198 = vector.shape_cast %197 : vector<1x8x24xf32> to vector<8x24xf32>
    %cst_116 = arith.constant dense<0.000000e+00> : vector<16x24xf32>
    %199 = tpu.matmul %186, %198, %cst_116 {dimension_numbers = #tpu.dot_dimension_numbers<[1], [0], [0], [1], [0, 0, 1, 1], [], []>} : vector<16x8xf32>, vector<8x24xf32>, vector<16x24xf32> -> vector<16x24xf32>
    %cst_117 = arith.constant 0.000000e+00 : f32
    %200 = vector.broadcast %cst_117 : f32 to vector<16x8xf32>
    %201 = vector.extract_strided_slice %199 {offsets = [0, 0], sizes = [16, 2], strides = [1, 1]} : vector<16x24xf32> to vector<16x2xf32>
    %202 = vector.extract_strided_slice %199 {offsets = [0, 8], sizes = [16, 2], strides = [1, 1]} : vector<16x24xf32> to vector<16x2xf32>
    %203 = vector.extract_strided_slice %199 {offsets = [0, 16], sizes = [16, 2], strides = [1, 1]} : vector<16x24xf32> to vector<16x2xf32>
    %cst_118 = arith.constant dense<0.000000e+00> : vector<16x16xf32>
    %204 = tpu.matmul %201, %202, %cst_118 {dimension_numbers = #tpu.dot_dimension_numbers<[1], [1], [0], [0], [0, 0, 1, 0], [], []>} : vector<16x2xf32>, vector<16x2xf32>, vector<16x16xf32> -> vector<16x16xf32>
    %c0_119 = arith.constant 0 : index
    %c0_120 = arith.constant 0 : index
    %c0_121 = arith.constant 0 : index
    %205 = vector.load %arg6[%c0_119, %c0_120, %c0_121] : memref<4x16x16xf32, #tpu.memory_space<vmem>>, vector<1x16x16xf32>
    %206 = vector.shape_cast %205 : vector<1x16x16xf32> to vector<16x16xf32>
    %207 = arith.mulf %204, %206 : vector<16x16xf32>
    %cst_122 = arith.constant dense<0.000000e+00> : vector<16x2xf32>
    %208 = tpu.matmul %207, %203, %cst_122 {dimension_numbers = #tpu.dot_dimension_numbers<[1], [0], [0], [1], [0, 0, 1, 1], [], []>} : vector<16x16xf32>, vector<16x2xf32>, vector<16x2xf32> -> vector<16x2xf32>
    %209 = vector.extract_strided_slice %196 {offsets = [0, 0], sizes = [2, 8], strides = [1, 1]} : vector<8x8xf32> to vector<2x8xf32>
    %cst_123 = arith.constant dense<0.000000e+00> : vector<16x8xf32>
    %210 = tpu.matmul %208, %209, %cst_123 {dimension_numbers = #tpu.dot_dimension_numbers<[1], [0], [0], [1], [0, 0, 1, 1], [], []>} : vector<16x2xf32>, vector<2x8xf32>, vector<16x8xf32> -> vector<16x8xf32>
    %211 = arith.addf %200, %210 : vector<16x8xf32>
    %212 = vector.extract_strided_slice %199 {offsets = [0, 2], sizes = [16, 2], strides = [1, 1]} : vector<16x24xf32> to vector<16x2xf32>
    %213 = vector.extract_strided_slice %199 {offsets = [0, 10], sizes = [16, 2], strides = [1, 1]} : vector<16x24xf32> to vector<16x2xf32>
    %214 = vector.extract_strided_slice %199 {offsets = [0, 18], sizes = [16, 2], strides = [1, 1]} : vector<16x24xf32> to vector<16x2xf32>
    %cst_124 = arith.constant dense<0.000000e+00> : vector<16x16xf32>
    %215 = tpu.matmul %212, %213, %cst_124 {dimension_numbers = #tpu.dot_dimension_numbers<[1], [1], [0], [0], [0, 0, 1, 0], [], []>} : vector<16x2xf32>, vector<16x2xf32>, vector<16x16xf32> -> vector<16x16xf32>
    %c1_125 = arith.constant 1 : index
    %c0_126 = arith.constant 0 : index
    %c0_127 = arith.constant 0 : index
    %216 = vector.load %arg6[%c1_125, %c0_126, %c0_127] : memref<4x16x16xf32, #tpu.memory_space<vmem>>, vector<1x16x16xf32>
    %217 = vector.shape_cast %216 : vector<1x16x16xf32> to vector<16x16xf32>
    %218 = arith.mulf %215, %217 : vector<16x16xf32>
    %cst_128 = arith.constant dense<0.000000e+00> : vector<16x2xf32>
    %219 = tpu.matmul %218, %214, %cst_128 {dimension_numbers = #tpu.dot_dimension_numbers<[1], [0], [0], [1], [0, 0, 1, 1], [], []>} : vector<16x16xf32>, vector<16x2xf32>, vector<16x2xf32> -> vector<16x2xf32>
    %220 = vector.extract_strided_slice %196 {offsets = [2, 0], sizes = [2, 8], strides = [1, 1]} : vector<8x8xf32> to vector<2x8xf32>
    %cst_129 = arith.constant dense<0.000000e+00> : vector<16x8xf32>
    %221 = tpu.matmul %219, %220, %cst_129 {dimension_numbers = #tpu.dot_dimension_numbers<[1], [0], [0], [1], [0, 0, 1, 1], [], []>} : vector<16x2xf32>, vector<2x8xf32>, vector<16x8xf32> -> vector<16x8xf32>
    %222 = arith.addf %211, %221 : vector<16x8xf32>
    %223 = vector.extract_strided_slice %199 {offsets = [0, 4], sizes = [16, 2], strides = [1, 1]} : vector<16x24xf32> to vector<16x2xf32>
    %224 = vector.extract_strided_slice %199 {offsets = [0, 12], sizes = [16, 2], strides = [1, 1]} : vector<16x24xf32> to vector<16x2xf32>
    %225 = vector.extract_strided_slice %199 {offsets = [0, 20], sizes = [16, 2], strides = [1, 1]} : vector<16x24xf32> to vector<16x2xf32>
    %cst_130 = arith.constant dense<0.000000e+00> : vector<16x16xf32>
    %226 = tpu.matmul %223, %224, %cst_130 {dimension_numbers = #tpu.dot_dimension_numbers<[1], [1], [0], [0], [0, 0, 1, 0], [], []>} : vector<16x2xf32>, vector<16x2xf32>, vector<16x16xf32> -> vector<16x16xf32>
    %c2_131 = arith.constant 2 : index
    %c0_132 = arith.constant 0 : index
    %c0_133 = arith.constant 0 : index
    %227 = vector.load %arg6[%c2_131, %c0_132, %c0_133] : memref<4x16x16xf32, #tpu.memory_space<vmem>>, vector<1x16x16xf32>
    %228 = vector.shape_cast %227 : vector<1x16x16xf32> to vector<16x16xf32>
    %229 = arith.mulf %226, %228 : vector<16x16xf32>
    %cst_134 = arith.constant dense<0.000000e+00> : vector<16x2xf32>
    %230 = tpu.matmul %229, %225, %cst_134 {dimension_numbers = #tpu.dot_dimension_numbers<[1], [0], [0], [1], [0, 0, 1, 1], [], []>} : vector<16x16xf32>, vector<16x2xf32>, vector<16x2xf32> -> vector<16x2xf32>
    %231 = vector.extract_strided_slice %196 {offsets = [4, 0], sizes = [2, 8], strides = [1, 1]} : vector<8x8xf32> to vector<2x8xf32>
    %cst_135 = arith.constant dense<0.000000e+00> : vector<16x8xf32>
    %232 = tpu.matmul %230, %231, %cst_135 {dimension_numbers = #tpu.dot_dimension_numbers<[1], [0], [0], [1], [0, 0, 1, 1], [], []>} : vector<16x2xf32>, vector<2x8xf32>, vector<16x8xf32> -> vector<16x8xf32>
    %233 = arith.addf %222, %232 : vector<16x8xf32>
    %234 = vector.extract_strided_slice %199 {offsets = [0, 6], sizes = [16, 2], strides = [1, 1]} : vector<16x24xf32> to vector<16x2xf32>
    %235 = vector.extract_strided_slice %199 {offsets = [0, 14], sizes = [16, 2], strides = [1, 1]} : vector<16x24xf32> to vector<16x2xf32>
    %236 = vector.extract_strided_slice %199 {offsets = [0, 22], sizes = [16, 2], strides = [1, 1]} : vector<16x24xf32> to vector<16x2xf32>
    %cst_136 = arith.constant dense<0.000000e+00> : vector<16x16xf32>
    %237 = tpu.matmul %234, %235, %cst_136 {dimension_numbers = #tpu.dot_dimension_numbers<[1], [1], [0], [0], [0, 0, 1, 0], [], []>} : vector<16x2xf32>, vector<16x2xf32>, vector<16x16xf32> -> vector<16x16xf32>
    %c3_137 = arith.constant 3 : index
    %c0_138 = arith.constant 0 : index
    %c0_139 = arith.constant 0 : index
    %238 = vector.load %arg6[%c3_137, %c0_138, %c0_139] : memref<4x16x16xf32, #tpu.memory_space<vmem>>, vector<1x16x16xf32>
    %239 = vector.shape_cast %238 : vector<1x16x16xf32> to vector<16x16xf32>
    %240 = arith.mulf %237, %239 : vector<16x16xf32>
    %cst_140 = arith.constant dense<0.000000e+00> : vector<16x2xf32>
    %241 = tpu.matmul %240, %236, %cst_140 {dimension_numbers = #tpu.dot_dimension_numbers<[1], [0], [0], [1], [0, 0, 1, 1], [], []>} : vector<16x16xf32>, vector<16x2xf32>, vector<16x2xf32> -> vector<16x2xf32>
    %242 = vector.extract_strided_slice %196 {offsets = [6, 0], sizes = [2, 8], strides = [1, 1]} : vector<8x8xf32> to vector<2x8xf32>
    %cst_141 = arith.constant dense<0.000000e+00> : vector<16x8xf32>
    %243 = tpu.matmul %241, %242, %cst_141 {dimension_numbers = #tpu.dot_dimension_numbers<[1], [0], [0], [1], [0, 0, 1, 1], [], []>} : vector<16x2xf32>, vector<2x8xf32>, vector<16x8xf32> -> vector<16x8xf32>
    %244 = arith.addf %233, %243 : vector<16x8xf32>
    %245 = arith.addf %186, %244 : vector<16x8xf32>
    %cst_142 = arith.constant dense<0.000000e+00> : vector<16xf32>
    %246 = vector.multi_reduction <add>, %245, %cst_142 [1] : vector<16x8xf32> to vector<16xf32>
    %247 = vector.shape_cast %246 : vector<16xf32> to vector<16x1xf32>
    %cst_143 = arith.constant 8.000000e+00 : f32
    %248 = vector.broadcast %cst_143 : f32 to vector<16x1xf32>
    %249 = arith.divf %247, %248 : vector<16x1xf32>
    %250 = vector.broadcast %249 : vector<16x1xf32> to vector<16x8xf32>
    %251 = arith.subf %245, %250 : vector<16x8xf32>
    %252 = arith.mulf %251, %251 : vector<16x8xf32>
    %cst_144 = arith.constant dense<0.000000e+00> : vector<16xf32>
    %253 = vector.multi_reduction <add>, %252, %cst_144 [1] : vector<16x8xf32> to vector<16xf32>
    %254 = vector.shape_cast %253 : vector<16xf32> to vector<16x1xf32>
    %cst_145 = arith.constant 8.000000e+00 : f32
    %255 = vector.broadcast %cst_145 : f32 to vector<16x1xf32>
    %256 = arith.divf %254, %255 : vector<16x1xf32>
    %257 = vector.broadcast %249 : vector<16x1xf32> to vector<16x8xf32>
    %258 = arith.subf %245, %257 : vector<16x8xf32>
    %cst_146 = arith.constant 9.99999974E-6 : f32
    %259 = vector.broadcast %cst_146 : f32 to vector<16x1xf32>
    %260 = arith.addf %256, %259 : vector<16x1xf32>
    %261 = math.rsqrt %260 : vector<16x1xf32>
    %262 = vector.broadcast %261 : vector<16x1xf32> to vector<16x8xf32>
    %263 = arith.mulf %258, %262 : vector<16x8xf32>
    %264 = vector.broadcast %189 : vector<1x8xf32> to vector<16x8xf32>
    %265 = arith.mulf %263, %264 : vector<16x8xf32>
    %266 = vector.broadcast %190 : vector<1x8xf32> to vector<16x8xf32>
    %267 = arith.addf %265, %266 : vector<16x8xf32>
    %c1_147 = arith.constant 1 : index
    %c0_148 = arith.constant 0 : index
    %c0_149 = arith.constant 0 : index
    %268 = vector.load %arg13[%c1_147, %c0_148, %c0_149] : memref<2x8x16xf32, #tpu.memory_space<vmem>>, vector<1x8x16xf32>
    %269 = vector.shape_cast %268 : vector<1x8x16xf32> to vector<8x16xf32>
    %cst_150 = arith.constant dense<0.000000e+00> : vector<16x16xf32>
    %270 = tpu.matmul %267, %269, %cst_150 {dimension_numbers = #tpu.dot_dimension_numbers<[1], [0], [0], [1], [0, 0, 1, 1], [], []>} : vector<16x8xf32>, vector<8x16xf32>, vector<16x16xf32> -> vector<16x16xf32>
    %271 = vector.broadcast %191 : vector<1x16xf32> to vector<16x16xf32>
    %272 = arith.addf %270, %271 : vector<16x16xf32>
    %273 = arith.mulf %272, %272 : vector<16x16xf32>
    %274 = arith.mulf %272, %273 : vector<16x16xf32>
    %cst_151 = arith.constant 4.471500e-02 : f32
    %275 = vector.broadcast %cst_151 : f32 to vector<16x16xf32>
    %276 = arith.mulf %275, %274 : vector<16x16xf32>
    %277 = arith.addf %272, %276 : vector<16x16xf32>
    %cst_152 = arith.constant 0.797884583 : f32
    %278 = vector.broadcast %cst_152 : f32 to vector<16x16xf32>
    %279 = arith.mulf %278, %277 : vector<16x16xf32>
    %280 = math.tanh %279 : vector<16x16xf32>
    %cst_153 = arith.constant 1.000000e+00 : f32
    %281 = vector.broadcast %cst_153 : f32 to vector<16x16xf32>
    %282 = arith.addf %281, %280 : vector<16x16xf32>
    %cst_154 = arith.constant 5.000000e-01 : f32
    %283 = vector.broadcast %cst_154 : f32 to vector<16x16xf32>
    %284 = arith.mulf %283, %282 : vector<16x16xf32>
    %285 = arith.mulf %272, %284 : vector<16x16xf32>
    %c1_155 = arith.constant 1 : index
    %c0_156 = arith.constant 0 : index
    %c0_157 = arith.constant 0 : index
    %286 = vector.load %arg14[%c1_155, %c0_156, %c0_157] : memref<2x16x8xf32, #tpu.memory_space<vmem>>, vector<1x16x8xf32>
    %287 = vector.shape_cast %286 : vector<1x16x8xf32> to vector<16x8xf32>
    %cst_158 = arith.constant dense<0.000000e+00> : vector<16x8xf32>
    %288 = tpu.matmul %285, %287, %cst_158 {dimension_numbers = #tpu.dot_dimension_numbers<[1], [0], [0], [1], [0, 0, 1, 1], [], []>} : vector<16x16xf32>, vector<16x8xf32>, vector<16x8xf32> -> vector<16x8xf32>
    %289 = vector.broadcast %192 : vector<1x8xf32> to vector<16x8xf32>
    %290 = arith.addf %288, %289 : vector<16x8xf32>
    %291 = arith.addf %267, %290 : vector<16x8xf32>
    %cst_159 = arith.constant dense<0.000000e+00> : vector<16xf32>
    %292 = vector.multi_reduction <add>, %291, %cst_159 [1] : vector<16x8xf32> to vector<16xf32>
    %293 = vector.shape_cast %292 : vector<16xf32> to vector<16x1xf32>
    %cst_160 = arith.constant 8.000000e+00 : f32
    %294 = vector.broadcast %cst_160 : f32 to vector<16x1xf32>
    %295 = arith.divf %293, %294 : vector<16x1xf32>
    %296 = vector.broadcast %295 : vector<16x1xf32> to vector<16x8xf32>
    %297 = arith.subf %291, %296 : vector<16x8xf32>
    %298 = arith.mulf %297, %297 : vector<16x8xf32>
    %cst_161 = arith.constant dense<0.000000e+00> : vector<16xf32>
    %299 = vector.multi_reduction <add>, %298, %cst_161 [1] : vector<16x8xf32> to vector<16xf32>
    %300 = vector.shape_cast %299 : vector<16xf32> to vector<16x1xf32>
    %cst_162 = arith.constant 8.000000e+00 : f32
    %301 = vector.broadcast %cst_162 : f32 to vector<16x1xf32>
    %302 = arith.divf %300, %301 : vector<16x1xf32>
    %303 = vector.broadcast %295 : vector<16x1xf32> to vector<16x8xf32>
    %304 = arith.subf %291, %303 : vector<16x8xf32>
    %cst_163 = arith.constant 9.99999974E-6 : f32
    %305 = vector.broadcast %cst_163 : f32 to vector<16x1xf32>
    %306 = arith.addf %302, %305 : vector<16x1xf32>
    %307 = math.rsqrt %306 : vector<16x1xf32>
    %308 = vector.broadcast %307 : vector<16x1xf32> to vector<16x8xf32>
    %309 = arith.mulf %304, %308 : vector<16x8xf32>
    %310 = vector.broadcast %193 : vector<1x8xf32> to vector<16x8xf32>
    %311 = arith.mulf %309, %310 : vector<16x8xf32>
    %312 = vector.broadcast %194 : vector<1x8xf32> to vector<16x8xf32>
    %313 = arith.addf %311, %312 : vector<16x8xf32>
    %cst_164 = arith.constant dense<0.000000e+00> : vector<16xf32>
    %314 = vector.multi_reduction <add>, %313, %cst_164 [1] : vector<16x8xf32> to vector<16xf32>
    %315 = vector.shape_cast %314 : vector<16xf32> to vector<16x1xf32>
    %cst_165 = arith.constant 8.000000e+00 : f32
    %316 = vector.broadcast %cst_165 : f32 to vector<16x1xf32>
    %317 = arith.divf %315, %316 : vector<16x1xf32>
    %c0_166 = arith.constant 0 : index
    %c0_167 = arith.constant 0 : index
    %318 = vector.load %arg16[%c0_166, %c0_167] : memref<8x4xf32, #tpu.memory_space<vmem>>, vector<8x4xf32>
    %319 = vector.extract_strided_slice %318 {offsets = [0, 0], sizes = [2, 2], strides = [1, 1]} : vector<8x4xf32> to vector<2x2xf32>
    %320 = vector.extract_strided_slice %318 {offsets = [2, 0], sizes = [1, 2], strides = [1, 1]} : vector<8x4xf32> to vector<1x2xf32>
    %321 = vector.extract_strided_slice %318 {offsets = [3, 0], sizes = [1, 2], strides = [1, 1]} : vector<8x4xf32> to vector<1x2xf32>
    %322 = vector.extract_strided_slice %318 {offsets = [4, 0], sizes = [1, 1], strides = [1, 1]} : vector<8x4xf32> to vector<1x1xf32>
    %323 = vector.extract_strided_slice %319 {offsets = [0, 0], sizes = [1, 2], strides = [1, 1]} : vector<2x2xf32> to vector<1x2xf32>
    %324 = vector.broadcast %52 : f32 to vector<1x2xf32>
    %325 = arith.mulf %324, %323 : vector<1x2xf32>
    %326 = vector.extract_strided_slice %319 {offsets = [1, 0], sizes = [1, 2], strides = [1, 1]} : vector<2x2xf32> to vector<1x2xf32>
    %327 = vector.broadcast %57 : f32 to vector<1x2xf32>
    %328 = arith.mulf %327, %326 : vector<1x2xf32>
    %329 = arith.addf %325, %328 : vector<1x2xf32>
    %330 = vector.broadcast %317 : vector<16x1xf32> to vector<16x2xf32>
    %331 = vector.broadcast %329 : vector<1x2xf32> to vector<16x2xf32>
    %332 = arith.mulf %330, %331 : vector<16x2xf32>
    %333 = vector.broadcast %320 : vector<1x2xf32> to vector<16x2xf32>
    %334 = arith.addf %332, %333 : vector<16x2xf32>
    %cst_168 = arith.constant 0.000000e+00 : f32
    %335 = vector.broadcast %cst_168 : f32 to vector<16x2xf32>
    %336 = arith.cmpf ogt, %334, %335 : vector<16x2xf32>
    %cst_169 = arith.constant 0.00999999977 : f32
    %337 = vector.broadcast %cst_169 : f32 to vector<16x2xf32>
    %338 = arith.mulf %337, %334 : vector<16x2xf32>
    %339 = arith.select %336, %334, %338 : vector<16x2xi1>, vector<16x2xf32>
    %340 = vector.broadcast %321 : vector<1x2xf32> to vector<16x2xf32>
    %341 = arith.mulf %339, %340 : vector<16x2xf32>
    %cst_170 = arith.constant dense<0.000000e+00> : vector<16xf32>
    %342 = vector.multi_reduction <add>, %341, %cst_170 [1] : vector<16x2xf32> to vector<16xf32>
    %343 = vector.shape_cast %342 : vector<16xf32> to vector<16x1xf32>
    %344 = vector.broadcast %322 : vector<1x1xf32> to vector<16x1xf32>
    %345 = arith.addf %343, %344 : vector<16x1xf32>
    %346 = vector.shape_cast %345 : vector<16x1xf32> to vector<1x16x1xf32>
    %cst_171 = arith.constant dense<0.000000e+00> : vector<1xf32>
    %347 = vector.multi_reduction <add>, %346, %cst_171 [1, 2] : vector<1x16x1xf32> to vector<1xf32>
    %348 = vector.shape_cast %347 : vector<1xf32> to vector<1x1x1xf32>
    %349 = vector.extract %348[0, 0, 0] : f32 from vector<1x1x1xf32>
    %350 = vector.broadcast %349 : f32 to vector<1x1x1xf32>
    %c0_172 = arith.constant 0 : index
    %c0_173 = arith.constant 0 : index
    %c0_174 = arith.constant 0 : index
    %351 = vector.load %arg17[%c0_172, %c0_173, %c0_174] : memref<1x1x1xf32, #tpu.memory_space<vmem>>, vector<1x1x1xf32>
    tpu.vector_store %arg17[%c0_172, %c0_173, %c0_174], %350 {strides = array<i32>} : memref<1x1x1xf32, #tpu.memory_space<vmem>>, vector<1x1x1xf32>,
    return
  }
  func.func @transform_0(%arg0: i32) -> (i32, i32, i32) {
    %c0_i32 = arith.constant 0 : i32
    %c0_i32_0 = arith.constant 0 : i32
    %c0_i32_1 = arith.constant 0 : i32
    return %arg0, %c0_i32, %c0_i32_0 : i32, i32, i32
  }
  func.func @transform_1(%arg0: i32) -> (i32, i32, i32) {
    %c0_i32 = arith.constant 0 : i32
    %c0_i32_0 = arith.constant 0 : i32
    %c0_i32_1 = arith.constant 0 : i32
    return %arg0, %c0_i32, %c0_i32_0 : i32, i32, i32
  }
  func.func @transform_2(%arg0: i32) -> (i32, i32, i32) {
    %c0_i32 = arith.constant 0 : i32
    %c0_i32_0 = arith.constant 0 : i32
    %c0_i32_1 = arith.constant 0 : i32
    return %arg0, %c0_i32, %c0_i32_0 : i32, i32, i32
  }
  func.func @transform_3(%arg0: i32) -> (i32, i32, i32) {
    %c0_i32 = arith.constant 0 : i32
    %c0_i32_0 = arith.constant 0 : i32
    %c0_i32_1 = arith.constant 0 : i32
    return %arg0, %c0_i32, %c0_i32_0 : i32, i32, i32
  }
  func.func @transform_4(%arg0: i32) -> (i32, i32, i32) {
    %c0_i32 = arith.constant 0 : i32
    %c0_i32_0 = arith.constant 0 : i32
    %c0_i32_1 = arith.constant 0 : i32
    return %arg0, %c0_i32, %c0_i32_0 : i32, i32, i32
  }
  func.func @transform_5(%arg0: i32) -> (i32, i32, i32) {
    %c0_i32 = arith.constant 0 : i32
    %c0_i32_0 = arith.constant 0 : i32
    %c0_i32_1 = arith.constant 0 : i32
    %c0_i32_2 = arith.constant 0 : i32
    return %c0_i32, %c0_i32_0, %c0_i32_1 : i32, i32, i32
  }
  func.func @transform_6(%arg0: i32) -> (i32, i32, i32) {
    %c0_i32 = arith.constant 0 : i32
    %c0_i32_0 = arith.constant 0 : i32
    %c0_i32_1 = arith.constant 0 : i32
    %c0_i32_2 = arith.constant 0 : i32
    return %c0_i32, %c0_i32_0, %c0_i32_1 : i32, i32, i32
  }
  func.func @transform_7(%arg0: i32) -> (i32, i32, i32) {
    %c0_i32 = arith.constant 0 : i32
    %c0_i32_0 = arith.constant 0 : i32
    %c0_i32_1 = arith.constant 0 : i32
    %c0_i32_2 = arith.constant 0 : i32
    return %c0_i32, %c0_i32_0, %c0_i32_1 : i32, i32, i32
  }
  func.func @transform_8(%arg0: i32) -> (i32, i32, i32) {
    %c0_i32 = arith.constant 0 : i32
    %c0_i32_0 = arith.constant 0 : i32
    %c0_i32_1 = arith.constant 0 : i32
    %c0_i32_2 = arith.constant 0 : i32
    return %c0_i32, %c0_i32_0, %c0_i32_1 : i32, i32, i32
  }
  func.func @transform_9(%arg0: i32) -> (i32, i32, i32) {
    %c0_i32 = arith.constant 0 : i32
    %c0_i32_0 = arith.constant 0 : i32
    %c0_i32_1 = arith.constant 0 : i32
    %c0_i32_2 = arith.constant 0 : i32
    return %c0_i32, %c0_i32_0, %c0_i32_1 : i32, i32, i32
  }
  func.func @transform_10(%arg0: i32) -> (i32, i32, i32) {
    %c0_i32 = arith.constant 0 : i32
    %c0_i32_0 = arith.constant 0 : i32
    %c0_i32_1 = arith.constant 0 : i32
    %c0_i32_2 = arith.constant 0 : i32
    return %c0_i32, %c0_i32_0, %c0_i32_1 : i32, i32, i32
  }
  func.func @transform_11(%arg0: i32) -> (i32, i32, i32) {
    %c0_i32 = arith.constant 0 : i32
    %c0_i32_0 = arith.constant 0 : i32
    %c0_i32_1 = arith.constant 0 : i32
    %c0_i32_2 = arith.constant 0 : i32
    return %c0_i32, %c0_i32_0, %c0_i32_1 : i32, i32, i32
  }
  func.func @transform_12(%arg0: i32) -> (i32, i32, i32) {
    %c0_i32 = arith.constant 0 : i32
    %c0_i32_0 = arith.constant 0 : i32
    %c0_i32_1 = arith.constant 0 : i32
    %c0_i32_2 = arith.constant 0 : i32
    return %c0_i32, %c0_i32_0, %c0_i32_1 : i32, i32, i32
  }
  func.func @transform_13(%arg0: i32) -> (i32, i32, i32) {
    %c0_i32 = arith.constant 0 : i32
    %c0_i32_0 = arith.constant 0 : i32
    %c0_i32_1 = arith.constant 0 : i32
    %c0_i32_2 = arith.constant 0 : i32
    return %c0_i32, %c0_i32_0, %c0_i32_1 : i32, i32, i32
  }
  func.func @transform_14(%arg0: i32) -> (i32, i32, i32) {
    %c0_i32 = arith.constant 0 : i32
    %c0_i32_0 = arith.constant 0 : i32
    %c0_i32_1 = arith.constant 0 : i32
    %c0_i32_2 = arith.constant 0 : i32
    return %c0_i32, %c0_i32_0, %c0_i32_1 : i32, i32, i32
  }
  func.func @transform_15(%arg0: i32) -> (i32, i32) {
    %c0_i32 = arith.constant 0 : i32
    %c0_i32_0 = arith.constant 0 : i32
    %c0_i32_1 = arith.constant 0 : i32
    return %c0_i32, %c0_i32_0 : i32, i32
  }
  func.func @transform_16(%arg0: i32) -> (i32, i32, i32) {
    %c0_i32 = arith.constant 0 : i32
    %c0_i32_0 = arith.constant 0 : i32
    %c0_i32_1 = arith.constant 0 : i32
    return %arg0, %c0_i32, %c0_i32_0 : i32, i32, i32
  }
}

</mosaic_0001>

<bundles_post_ra>
// kernel: batched_forward.1
= control target key start
LH: loop header
LB: loop body
LE: loop exit
PB: predicated region body
PF: predicated region fallthrough
CT: control target
= control target key end

     0   :  { %s2624_s21 = smov 0   ;;  %s2999_s0 = inlined_call_operand.vmem [shape: f32[2,16,8], index: 0, kind: input, shape index: {}]   ;;  %s3000_s1 = inlined_call_operand.vmem [shape: f32[2,8,8], index: 1, kind: input, shape index: {}]   ;;  %s3001_s2 = inlined_call_operand.vmem [shape: f32[2,8,8], index: 2, kind: input, shape index: {}]   ;;  %s3002_s3 = inlined_call_operand.vmem [shape: f32[2,8,8], index: 3, kind: input, shape index: {}]   ;;  %s3003_s4 = inlined_call_operand.vmem [shape: f32[2,8,8], index: 4, kind: input, shape index: {}]   ;;  %s3004_s5 = inlined_call_operand.vmem [shape: f32[4,16,16], index: 5, kind: input, shape index: {}]   ;;  %s3005_s6 = inlined_call_operand.vmem [shape: f32[2,8,8], index: 6, kind: input, shape index: {}]   ;;  %s3006_s7 = inlined_call_operand.vmem [shape: f32[2,1,8], index: 7, kind: input, shape index: {}]   ;;  %s3007_s8 = inlined_call_operand.vmem [shape: f32[2,8,8], index: 8, kind: input, shape index: {}]   ;;  %s3008_s9 = inlined_call_operand.vmem [shape: f32[2,1,8], index: 9, kind: input, shape index: {}]   ;;  %s3009_s10 = inlined_call_operand.vmem [shape: f32[2,8,24], index: 10, kind: input, shape index: {}]   ;;  %s3010_s11 = inlined_call_operand.vmem [shape: f32[2,8,8], index: 11, kind: input, shape index: {}]   ;;  %s3011_s12 = inlined_call_operand.vmem [shape: f32[2,8,16], index: 12, kind: input, shape index: {}]   ;;  %s3012_s13 = inlined_call_operand.vmem [shape: f32[2,16,8], index: 13, kind: input, shape index: {}]   ;;  %s3013_s14 = inlined_call_operand.vmem [shape: f32[2,8,16], index: 14, kind: input, shape index: {}]   ;;  %s3014_s15 = inlined_call_operand.vmem [shape: f32[8,4], index: 15, kind: input, shape index: {}]   ;;  %s3015_s16 = inlined_call_operand.vmem [shape: f32[2,1,1], index: 16, kind: output, shape index: {}]  }
   0x1   :  { %3019 = sst [smem:[#allocation3_spill]] %s2999_s0 }
   0x2   :  { %3020 = sst [smem:[#allocation4_spill]] %s3015_s16 }
   0x3 LB: > { %3021 = sst [smem:[#allocation2_spill]] %s2525_s21  ;;  %s2301_s22 = sadd.s32 4294967295, %s2525_s21   ;;  %s2525_s21 = sphi %s2624_s21, %s26_s21  }
   0x4   : > { %p2305_p0 = scmp.ge.s32.totalorder %s2525_s21, 1  ;;  %p498_p1 = scmp.lt.s32.totalorder %s2525_s21, 3 }
   0x6   : > { %p499_p2 = pnand %p2305_p0, %p498_p1 }
   0x7   : > { %p562_p3 = scmp.lt.s32.totalorder (!%p499_p2), %s2301_s22, 1  ;;  %s2527_s30 = smov (!%p499_p2), 118  }
   0x8   : > { %502 = sbr.rel (%p499_p2) target bundleno = 3966 (0xf7e), region = 84  ;;  %s2528_s0 = smov (!%p499_p2), 126  }
   0x9   : > { %s2530_s18 = smov (!%p499_p2), 112   ;;  %s2531_s19 = smov (!%p499_p2), 116  }
   0xa   : > { %s2534_s25 = smov (!%p499_p2), 122   ;;  %s3025_s28 = sld [smem:[#allocation4_spill]] (!%p499_p2) }
   0xd   : > { %s3028_s22 = smov (!%p562_p3, %s2301_s22), 1  ;;  %vm588_vm0 = vcmask 64512   ;;  %v823_v2 = vld [vmem:[%s3009_s10] sm:$0xff]  ;;  %vm859_vm1 = vcmask 15360   ;;  %vm1018_vm2 = vcmask 1041408   ;;  %v2315_v44 = vld [vmem:[%s3005_s6 + $0x8] sm:$0xff] }
   0xe   : > { %s2308_s23 = sshll.u32 %s3028_s22, 3  ;;  %s2422_s24 = sshll.u32 %s3028_s22, 4  ;;  %v717_v7 = vld [vmem:[%s3007_s8] sm:$0xff]  ;;  %v2321_v45 = vld [vmem:[%s3007_s8 + $0x8] sm:$0xff]  ;;  %vm901_vm3 = vcmask 130048  }
   0xf   : > { %s570_s26 = scalar_lea.vmem %s3000_s1, %s2308_s23  ;;  %s574_s29 = scalar_lea.vmem %s3001_s2, %s2308_s23  ;;  %740 = vmatpush.msra.mxu1 %v717_v7  ;;  %v612_v8 = vld [vmem:[%s3005_s6] sm:$0xff]  ;;  %v2737_v52 = vld [vmem:[%s3004_s5 + $0x8] sm:$0xff]  ;;  %v2773_v7 = vld [vmem:[%s3004_s5 + $0x18] sm:$0xff] }
  0x10   : > { %v586_v0 = vld [vmem:[%s570_s26] sm:$0xff]  ;;  %s578_s17 = scalar_lea.vmem %s3002_s3, %s2308_s23  ;;  %s582_s20 = scalar_lea.vmem %s3003_s4, %s2308_s23  ;;  %635 = vmatpush.msra.mxu3 %v612_v8 }
  0x11   : > { %v692_v1 = vld [vmem:[%s574_s29] sm:$0xff]  ;;  %607 = vmatpush.msra.mxu2 %v586_v0  ;;  %s3022_s26 = sld [smem:[#allocation3_spill]]  ;;  %s2535_s23 = smov 108  }
  0x12   : > { %712 = vmatpush.msra.mxu0 %v692_v1  ;;  %v2650_v3 = vld [vmem:[%s578_s17] sm:$0xff]  ;;  %s2529_s17 = smov 120   ;;  %686 = vmatpush.msrb.mxu3 %v2315_v44  ;;  %v2764_v1 = vld [vmem:[%s3004_s5 + $0x10] sm:$0xff] }
  0x13   : > { %v2652_v4 = vld [vmem:[%s582_s20] sm:$0xff]  ;;  %2312 = vmatmul.msk.f32.vlgmr.msra.gmra.mxu2 %vm588_vm0, %v2650_v3  ;;  %s2532_s20 = smov 114  }
  0x14   : > { %2318 = vmatmul.msk.f32.vlgmr.msra.gmra.mxu0 %vm588_vm0, %v2652_v4  ;;  %v2489_v17 = vld [vmem:[%s3008_s9] ss:$0 sm:$0xff] }
  0x15   : > { %845 = vmatpush.msrb.mxu0 %v823_v2  ;;  %v2490_v18 = vld [vmem:[%s3006_s7] ss:$0 sm:$0xff] }
  0x16   : > { %v822_v41 = vld [vmem:[%s3010_s11] sm:$0xff] }
  0x17   : > { %s566_s27 = scalar_lea.vmem %s3022_s26, %s2422_s24  ;;  %s2533_s24 = smov 124   ;;  %v1011_v42 = vrot.slane %v822_v41, 2  ;;  %v1154_v43 = vrot.slane %v822_v41, 4  ;;  %v2729_v48 = vld [vmem:[%s3004_s5] sm:$0xff]  ;;  %v1267_v2 = vrot.slane %v822_v41, 6 }
  0x18   : > { %v2662_v5 = vld [vmem:[%s566_s27] sm:$0xff]  ;;  %v2666_v6 = vld [vmem:[%s566_s27 + $0x8] sm:$0xff]  ;;  %s3018_s26 = smov 110   ;;  %s3017_s27 = smov 106  }
  0x1c   : > { %2324 = vmatmul.msk.f32.vlgmr.msrb.gmra.mxu0 %vm588_vm0, %v2662_v5 }
  0x24   : > { %2325 = vmatmul.msk.f32.gmra.mxu0 %vm588_vm0, %v2666_v6 }
  0x91   : > { %v714_v9 = vpop.f32.mrf.mxu0 }
  0x92   : > { %2319 = vmatmul.msk.f32.vlgmr.msra.gmra.mxu1 %vm588_vm0, %v714_v9 }
  0x96   : > { %v609_v10 = vpop.f32.mrf.mxu2 }
  0x97   : > { %2313 = vmatmul.msk.f32.vlgmr.msra.gmra.mxu3 %vm588_vm0, %v609_v10  ;;  %v2780_v10 = vld [vmem:[%s3004_s5 + $0x20] sm:$0xff] }
  0x98   : > { %791 = vmatpush.msra.mxu3 %v2321_v45 }
  0x99   : > { %v847_v11 = vpop.f32.mrf.mxu0 }
  0x9a   : > { %935 = vrot.lane.b32.xlu2 %v847_v11, %s2527_s30 }
  0xa1   : > { %v850_v12 = vpop.f32.mrf.mxu0 }
  0xa2   : > { %931 = vrot.lane.b32.xlu2 %v847_v11, %s2528_s0  ;;  %857 = vrot.lane.b32.xlu0 %v850_v12, %s2529_s17  ;;  %v2449_v13 = vpack.i.bf16 %v847_v11, %v850_v12 }
  0xa4   : > { %2450 = vrot.lane.b32.xlu1 %v2449_v13, %s2530_s18 }
  0xaa   : > { %1081 = vrot.lane.b32.xlu2 %v850_v12, %s2531_s19  ;;  %855 = vrot.lane.b32.xlu0 %v847_v11, %s2529_s17 }
  0xac   : > { %937 = vrot.lane.b32.xlu1 %v850_v12, %s2527_s30 }
  0xb2   : > { %1079 = vrot.lane.b32.xlu2 %v847_v11, %s2531_s19  ;;  %1194 = vrot.lane.b32.xlu0 %v850_v12, %s2532_s20 }
  0xb4   : > { %933 = vrot.lane.b32.xlu1 %v850_v12, %s2528_s0 }
  0xba   : > { %1077 = vrot.lane.b32.xlu2 %v850_v12, %s2533_s24  ;;  %1192 = vrot.lane.b32.xlu0 %v847_v11, %s2532_s20 }
  0xbc   : > { %1188 = vrot.lane.b32.xlu1 %v847_v11, %s2534_s25 }
  0xc2   : > { %2465 = vrot.lane.b32.xlu2 %v2449_v13, %s2535_s23  ;;  %1075 = vrot.lane.b32.xlu0 %v847_v11, %s2533_s24 }
  0xc4   : > { %1190 = vrot.lane.b32.xlu1 %v850_v12, %s2534_s25 }
  0xca   : > { %2455 = vrot.lane.b32.xlu0 %v2449_v13, %s3018_s26  ;;  %s585_s26 = scalar_lea.vmem %s3025_s28, %s3028_s22 }
  0xcc   : > { %2460 = vrot.lane.b32.xlu1 %v2449_v13, %s3017_s27  ;;  %v2787_v13 = vld [vmem:[%s3004_s5 + $0x28] sm:$0xff] }
  0xf4   : > { %v2696_v14 = vpop.permute.xlu2 %935 }
  0xfc   : > { %v2698_v16 = vpop.permute.xlu2 %931 }
 0x104   : > { %v1082_v26 = vpop.permute.xlu2 %1081 }
 0x10c   : > { %v1080_v31 = vpop.permute.xlu2 %1079 }
 0x10f   : > { %v742_v19 = vpop.f32.mrf.mxu1 }
 0x110   : > { %v743_v21 = vadd.f32 %v2489_v17, %v742_v19 }
 0x112   : > { %v745_v27 = vmax.f32 %v743_v21, 0.0 }
 0x114   : > { %v858_v15 = vpop.permute.xlu0 %857  ;;  %v1078_v33 = vpop.permute.xlu2 %1077 }
 0x115   : > { %2326 = vmatpush.xpose.msk.msrb.mxu1 %vm859_vm1, %v858_v15 }
 0x116   : > { %v2451_v24 = vpop.permute.xlu1 %2450 }
 0x117   : > { %v2452_v28 = vunpack.i.l.bf16 %v2451_v24  ;;  %v2453_v29 = vunpack.i.h.bf16 %v2451_v24 }
 0x11a   : > { %v637_v20 = vpop.f32.mrf.mxu3 }
 0x11b   : > { %v638_v22 = vadd.f32 %v2490_v18, %v637_v20  ;;  %v2794_v18 = vld [vmem:[%s3004_s5 + $0x30] sm:$0xff] }
 0x11c   : > { %v856_v23 = vpop.permute.xlu0 %855  ;;  %v2466_v36 = vpop.permute.xlu2 %2465 }
 0x11d   : > { %2327 = vmatpush.xpose.msk.msrb.mxu1 %vm859_vm1, %v856_v23  ;;  %v640_v25 = vmax.f32 %v638_v22, 0.0  ;;  %v2467_v39 = vunpack.i.l.bf16 %v2466_v36  ;;  %v2468_v40 = vunpack.i.h.bf16 %v2466_v36  ;;  %v2802_v22 = vld [vmem:[%s3004_s5 + $0x38] sm:$0xff] }
 0x11e   : > { %v938_v46 = vpop.permute.xlu1 %937 }
 0x11f   : > { %656 = vmatpush.msrb.mxu2 %v640_v25 }
 0x120   : > { %2328 = vmatmul.msk.f32.vlgmr.msrb.gmra.mxu1 %vm859_vm1, %v847_v11  ;;  %2314 = vmatmul.msk.f32.vlgmr.msrb.gmra.mxu2 %vm588_vm0, %v2650_v3 }
 0x121   : > { %761 = vmatpush.msra.mxu2 %v745_v27  ;;  %2340 = vmatpush.msk.msra.mxu1 %vm1018_vm2, %v1011_v42 }
 0x123   : > { %922 = vmatpush.msrb.mxu2 %v2452_v28  ;;  %2354 = vmatpush.msk.msrb.mxu1 %vm1018_vm2, %v1154_v43 }
 0x124   : > { %v1195_v30 = vpop.permute.xlu0 %1194 }
 0x125   : > { %923 = vmatpush.msrb.mxu2 %v2453_v29 }
 0x126   : > { %v934_v47 = vpop.permute.xlu1 %933 }
 0x128   : > { %2329 = vmatmul.msk.f32.gmra.mxu1 %vm859_vm1, %v850_v12  ;;  %2320 = vmatmul.msk.f32.vlgmr.msra.gmra.mxu2 %vm588_vm0, %v2652_v4 }
 0x129   : > { %2343 = vmatpush.msk.msra.mxu2 %vm1018_vm2, %v822_v41 }
 0x12c   : > { %v1193_v32 = vpop.permute.xlu0 %1192 }
 0x12e   : > { %v1189_v49 = vpop.permute.xlu1 %1188 }
 0x134   : > { %v1076_v34 = vpop.permute.xlu0 %1075 }
 0x136   : > { %v1191_v56 = vpop.permute.xlu1 %1190 }
 0x13c   : > { %v2456_v35 = vpop.permute.xlu0 %2455 }
 0x13d   : > { %v2457_v37 = vunpack.i.l.bf16 %v2456_v35  ;;  %v2458_v38 = vunpack.i.h.bf16 %v2456_v35 }
 0x13e   : > { %v2461_v58 = vpop.permute.xlu1 %2460 }
 0x13f   : > { %1001 = vmatpush.msra.mxu0 %v2457_v37  ;;  %v2462_v59 = vunpack.i.l.bf16 %v2461_v58  ;;  %v2463_v60 = vunpack.i.h.bf16 %v2461_v58 }
 0x141   : > { %1002 = vmatpush.msra.mxu0 %v2458_v38 }
 0x143   : > { %1145 = vmatpush.msrb.mxu0 %v2467_v39 }
 0x145   : > { %1146 = vmatpush.msrb.mxu0 %v2468_v40 }
 0x19d   : > { %v885_v50 = vpop.f32.mrf.mxu1 }
 0x19e   : > { %v893_v51 = vmul.f32 %v2729_v48, %v885_v50 }
 0x1a0   : > { %2330 = vmatmul.msk.f32.vlgmr.msrb.gmra.mxu2 %vm901_vm3, %v893_v51 }
 0x1a1   : > { %2357 = vmatpush.xpose.msk.msrb.mxu2 %vm859_vm1, %v1195_v30 }
 0x1a3   : > { %v658_v53 = vpop.f32.mrf.mxu2 }
 0x1a4   : > { %2317 = vmatmul.msk.f32.vlgmr.msrb.gmra.mxu3 %vm588_vm0, %v658_v53 }
 0x1a5   : > { %2358 = vmatpush.xpose.msk.msrb.mxu2 %vm859_vm1, %v1193_v32  ;;  %v888_v54 = vpop.f32.mrf.mxu1  ;;  %2332 = vmatpush.xpose.msk.msrb.mxu3 %vm859_vm1, %v938_v46  ;;  %v2538_v46 = vmov 8.0  }
 0x1a6   : > { %v894_v55 = vmul.f32 %v2737_v52, %v888_v54  ;;  %2493 = vrcp.f32 %v2538_v46 }
 0x1a8   : > { %2331 = vmatmul.msk.f32.gmra.mxu2 %vm901_vm3, %v894_v55 }
 0x1a9   : > { %2333 = vmatpush.xpose.msk.msrb.mxu3 %vm859_vm1, %v2696_v14 }
 0x1ab   : > { %v763_v57 = vpop.f32.mrf.mxu2 }
 0x1ac   : > { %2323 = vmatmul.msk.f32.vlgmr.msra.gmra.mxu3 %vm588_vm0, %v763_v57 }
 0x1ad   : > { %2346 = vmatpush.xpose.msk.msra.mxu3 %vm859_vm1, %v1082_v26 }
 0x1b1   : > { %2347 = vmatpush.xpose.msk.msra.mxu3 %vm859_vm1, %v1080_v31 }
 0x1b4   : > { %2334 = vmatmul.msk.f32.vlgmr.msrb.gmra.mxu3 %vm859_vm1, %v2698_v16 }
 0x1b5   : > { %1258 = vmatpush.msrb.mxu3 %v2462_v59 }
 0x1b7   : > { %1259 = vmatpush.msrb.mxu3 %v2463_v60 }
 0x1bc   : > { %2335 = vmatmul.msk.f32.gmra.mxu3 %vm859_vm1, %v934_v47  ;;  %v2494_v47 = vpop.eup %2493 }
 0x1bd   : > { %vm1314_vm4 = vweird.f32 %v2494_v47 }
 0x1c4   : > { %2348 = vmatmul.msk.f32.vlgmr.msra.gmra.mxu3 %vm859_vm1, %v1076_v34 }
 0x1cc   : > { %2349 = vmatmul.msk.f32.gmra.mxu3 %vm859_vm1, %v1078_v33 }
 0x223   : > { %v925_v61 = vpop.f32.mrf.mxu2 }
 0x224   : > { %2344 = vmatmul.msk.f32.vlgmr.msra.gmra.mxu2 %vm859_vm1, %v925_v61 }
 0x227   : > { %v2755_v62 = vpop.f32.mrf.mxu3 }
 0x22b   : > { %v928_v63 = vpop.f32.mrf.mxu2 }
 0x22c   : > { %2345 = vmatmul.msk.f32.gmra.mxu2 %vm859_vm1, %v928_v63 }
 0x22f   : > { %v2758_v0 = vpop.f32.mrf.mxu3 }
 0x234   : > { %2359 = vmatmul.msk.f32.vlgmr.msrb.gmra.mxu2 %vm859_vm1, %v1189_v49  ;;  %v1310_v49 = vmul.f32 8.0, %v2494_v47 }
 0x236   : > { %v1311_v50 = vsub.f32 1.0, %v1310_v49 }
 0x237   : > { %v964_v3 = vpop.f32.mrf.mxu3 }
 0x238   : > { %v973_v4 = vmul.f32 %v2764_v1, %v964_v3  ;;  %v1312_v51 = vmul.f32 %v2494_v47, %v1311_v50 }
 0x23a   : > { %2338 = vmatmul.msk.f32.vlgmr.msra.gmra.mxu0 %vm901_vm3, %v973_v4 }
 0x23b   : > { %2365 = vmatpush.msk.msra.mxu0 %vm1018_vm2, %v1267_v2  ;;  %v1360_v2 = vld [vmem:[%s3011_s12] sm:$0xff] }
 0x23c   : > { %2360 = vmatmul.msk.f32.gmra.mxu2 %vm859_vm1, %v1191_v56 }
 0x23f   : > { %v967_v8 = vpop.f32.mrf.mxu3 }
 0x240   : > { %v974_v9 = vmul.f32 %v2773_v7, %v967_v8 }
 0x242   : > { %2339 = vmatmul.msk.f32.gmra.mxu0 %vm901_vm3, %v974_v9 }
 0x247   : > { %v1108_v11 = vpop.f32.mrf.mxu3 }
 0x248   : > { %v1117_v12 = vmul.f32 %v2780_v10, %v1108_v11 }
 0x24a   : > { %2352 = vmatmul.msk.f32.vlgmr.msrb.gmra.mxu0 %vm901_vm3, %v1117_v12 }
 0x24f   : > { %v1111_v14 = vpop.f32.mrf.mxu3 }
 0x250   : > { %v1118_v15 = vmul.f32 %v2787_v13, %v1111_v14 }
 0x252   : > { %2353 = vmatmul.msk.f32.gmra.mxu0 %vm901_vm3, %v1118_v15 }
 0x2a7   : > { %v1069_v16 = vpop.f32.mrf.mxu2 }
 0x2af   : > { %v1072_v17 = vpop.f32.mrf.mxu2 }
 0x2b7   : > { %v1221_v19 = vpop.f32.mrf.mxu2  ;;  %v1004_v21 = vpop.f32.mrf.mxu0 }
 0x2b8   : > { %v1230_v20 = vmul.f32 %v2794_v18, %v1221_v19  ;;  %2341 = vmatmul.msk.f32.vlgmr.msra.gmra.mxu1 %vm859_vm1, %v1004_v21  ;;  %v2829_v19 = vld [vmem:[%s3013_s14] sm:$0xff] }
 0x2b9   : > { %1383 = vmatpush.msra.mxu1 %v1360_v2 }
 0x2ba   : > { %2363 = vmatmul.msk.f32.vlgmr.msrb.gmra.mxu3 %vm901_vm3, %v1230_v20 }
 0x2bf   : > { %v1224_v23 = vpop.f32.mrf.mxu2  ;;  %v1007_v25 = vpop.f32.mrf.mxu0 }
 0x2c0   : > { %v1231_v24 = vmul.f32 %v2802_v22, %v1224_v23  ;;  %2342 = vmatmul.msk.f32.gmra.mxu1 %vm859_vm1, %v1007_v25  ;;  %v1354_v25 = vperm.slane %v2829_v19, 0 }
 0x2c2   : > { %2364 = vmatmul.msk.f32.gmra.mxu3 %vm901_vm3, %v1231_v24 }
 0x2c7   : > { %v1148_v26 = vpop.f32.mrf.mxu0 }
 0x2c8   : > { %2355 = vmatmul.msk.f32.vlgmr.msrb.gmra.mxu1 %vm859_vm1, %v1148_v26 }
 0x2cf   : > { %v1151_v27 = vpop.f32.mrf.mxu0 }
 0x2d0   : > { %2356 = vmatmul.msk.f32.gmra.mxu1 %vm859_vm1, %v1151_v27 }
 0x335   : > { %v1038_v30 = vpop.f32.mrf.mxu1 }
 0x336   : > { %v1070_v33 = vadd.f32 %v1069_v16, %v1038_v30 }
 0x33d   : > { %v1261_v28 = vpop.f32.mrf.mxu3  ;;  %v1041_v31 = vpop.f32.mrf.mxu1 }
 0x33e   : > { %2366 = vmatmul.msk.f32.vlgmr.msra.gmra.mxu0 %vm859_vm1, %v1261_v28  ;;  %v1073_v39 = vadd.f32 %v1072_v17, %v1041_v31 }
 0x345   : > { %v1264_v29 = vpop.f32.mrf.mxu3  ;;  %v1180_v32 = vpop.f32.mrf.mxu1 }
 0x346   : > { %2367 = vmatmul.msk.f32.gmra.mxu0 %vm859_vm1, %v1264_v29  ;;  %v1186_v34 = vadd.f32 %v1180_v32, %v1070_v33  ;;  %v1357_v29 = vperm.slane %v2829_v19, 1 }
 0x34d   : > { %v1183_v38 = vpop.f32.mrf.mxu1 }
 0x34e   : > { %v1187_v41 = vadd.f32 %v1183_v38, %v1073_v39  ;;  %v1410_v39 = vld [vmem:[%s3012_s13 + $0x8] sm:$0xff] }
 0x34f   : > { %1432 = vmatpush.msra.mxu2 %v1410_v39 }
 0x3bb   : > { %v1293_v35 = vpop.f32.mrf.mxu0 }
 0x3bc   : > { %v1299_v36 = vadd.f32 %v1293_v35, %v1186_v34 }
 0x3be   : > { %v1301_v37 = vadd.f32 %v1299_v36, %v2662_v5  ;;  %v1313_v5 = vadd.f32 %v2494_v47, %v1312_v51 }
 0x3c0   : > { %v1303_v40 = vsel %vm588_vm0, %v1301_v37, 0.0  ;;  %v2815_v53 = vsel %vm1314_vm4, %v2494_v47, %v1313_v5 }
 0x3c1   : > { %1304 = vadd.xlane.f32.xlu0 %v1303_v40  ;;  %v1409_v40 = vld [vmem:[%s3012_s13] sm:$0xff] }
 0x3c2   : > { %1433 = vmatpush.msra.mxu2 %v1409_v40 }
 0x3c3   : > { %v1296_v42 = vpop.f32.mrf.mxu0 }
 0x3c4   : > { %v1300_v43 = vadd.f32 %v1296_v42, %v1187_v41  ;;  %v1361_v41 = vperm.slane %v2829_v19, 2 }
 0x3c6   : > { %v1302_v44 = vadd.f32 %v1300_v43, %v2666_v6 }
 0x3c8   : > { %v1306_v45 = vsel %vm588_vm0, %v1302_v44, 0.0 }
 0x3c9   : > { %1307 = vadd.xlane.f32.xlu1 %v1306_v45 }
 0x434   : > { %v1305_v54 = vpop.xlane.xlu0 %1304 }
 0x435   : > { %v1316_v55 = vmul.f32 %v2815_v53, %v1305_v54 }
 0x437   : > { %v1318_v56 = vsub.f32 %v1301_v37, %v1316_v55 }
 0x439   : > { %v1320_v57 = vmul.f32 %v1318_v56, %v1318_v56 }
 0x43b   : > { %v1322_v6 = vsel %vm588_vm0, %v1320_v57, 0.0 }
 0x43c   : > { %1323 = vadd.xlane.f32.xlu2 %v1322_v6  ;;  %v1308_v58 = vpop.xlane.xlu1 %1307 }
 0x43d   : > { %v1317_v59 = vmul.f32 %v2815_v53, %v1308_v58 }
 0x43f   : > { %v1319_v60 = vsub.f32 %v1302_v44, %v1317_v59 }
 0x441   : > { %v1321_v61 = vmul.f32 %v1319_v60, %v1319_v60 }
 0x443   : > { %v1325_v63 = vsel %vm588_vm0, %v1321_v61, 0.0 }
 0x444   : > { %1326 = vadd.xlane.f32.xlu2 %v1325_v63 }
 0x4af   : > { %v1324_v3 = vpop.xlane.xlu2 %1323 }
 0x4b0   : > { %v1328_v4 = vmul.f32 %v1324_v3, %v2815_v53 }
 0x4b2   : > { %v1330_v8 = vadd.f32 1e-05, %v1328_v4  ;;  %v1411_v4 = vperm.slane %v2829_v19, 3 }
 0x4b4   : > { %2495 = vrsqrt.f32 %v1330_v8  ;;  %vm1338_vm6 = vweird.f32 %v1330_v8 }
 0x4b7   : > { %v1327_v9 = vpop.xlane.xlu2 %1326 }
 0x4b8   : > { %v1329_v11 = vmul.f32 %v1327_v9, %v2815_v53 }
 0x4ba   : > { %v2496_v12 = vpop.eup %2495  ;;  %v1331_v14 = vadd.f32 1e-05, %v1329_v11 }
 0x4bb   : > { %v1333_v15 = vmul.f32 %v2496_v12, %v1330_v8  ;;  %vm1339_vm5 = vweird.f32 %v2496_v12 }
 0x4bc   : > { %2497 = vrsqrt.f32 %v1331_v14  ;;  %vm1340_vm7 = vmor %vm1338_vm6, %vm1339_vm5  ;;  %vm1348_vm9 = vweird.f32 %v1331_v14 }
 0x4bd   : > { %v1334_v16 = vmul.f32 %v2496_v12, %v1333_v15 }
 0x4bf   : > { %v1335_v17 = vmul.f32 0.5, %v1334_v16 }
 0x4c1   : > { %v1336_v20 = vsub.f32 1.5, %v1335_v17 }
 0x4c2   : > { %v2498_v21 = vpop.eup %2497 }
 0x4c3   : > { %v1337_v23 = vmul.f32 %v2496_v12, %v1336_v20  ;;  %v1343_v24 = vmul.f32 %v2498_v21, %v1331_v14  ;;  %vm1349_vm8 = vweird.f32 %v2498_v21 }
 0x4c4   : > { %vm1350_vm10 = vmor %vm1348_vm9, %vm1349_vm8 }
 0x4c5   : > { %v1341_v26 = vsel %vm1340_vm7, %v2496_v12, %v1337_v23  ;;  %v1344_v27 = vmul.f32 %v2498_v21, %v1343_v24 }
 0x4c6   : > { %v1352_v28 = vmul.f32 %v1341_v26, %v1318_v56 }
 0x4c7   : > { %v1345_v30 = vmul.f32 0.5, %v1344_v27 }
 0x4c8   : > { %v1355_v31 = vmul.f32 %v1354_v25, %v1352_v28 }
 0x4c9   : > { %v1346_v32 = vsub.f32 1.5, %v1345_v30 }
 0x4ca   : > { %v1358_v33 = vadd.f32 %v1357_v29, %v1355_v31  ;;  %v2374_v31 = vld [vmem:[%s3009_s10 + $0x8] sm:$0xff] }
 0x4cb   : > { %v1347_v34 = vmul.f32 %v2498_v21, %v1346_v32  ;;  %1520 = vmatpush.msra.mxu3 %v2374_v31 }
 0x4cc   : > { %2368 = vmatmul.msk.f32.vlgmr.msra.gmra.mxu1 %vm588_vm0, %v1358_v33 }
 0x4cd   : > { %v1351_v35 = vsel %vm1350_vm10, %v2498_v21, %v1347_v34 }
 0x4ce   : > { %v1353_v36 = vmul.f32 %v1351_v35, %v1319_v60 }
 0x4d0   : > { %v1356_v37 = vmul.f32 %v1354_v25, %v1353_v36 }
 0x4d2   : > { %v1359_v38 = vadd.f32 %v1357_v29, %v1356_v37 }
 0x4d4   : > { %2369 = vmatmul.msk.f32.gmra.mxu1 %vm588_vm0, %v1359_v38 }
 0x549   : > { %v1385_v42 = vpop.f32.mrf.mxu1 }
 0x54a   : > { %v1386_v43 = vadd.f32 %v1385_v42, %v1361_v41 }
 0x54c   : > { %v1391_v44 = vmul.f32 %v1386_v43, %v1386_v43 }
 0x54e   : > { %v1393_v45 = vmul.f32 %v1391_v44, %v1386_v43 }
 0x550   : > { %v1395_v46 = vmul.f32 0.044715, %v1393_v45 }
 0x551   : > { %v1388_v47 = vpop.f32.mrf.mxu1 }
 0x552   : > { %v1397_v49 = vadd.f32 %v1395_v46, %v1386_v43  ;;  %v1389_v50 = vadd.f32 %v1388_v47, %v1361_v41  ;;  %v1487_v46 = vperm.slane %v2829_v19, 4 }
 0x554   : > { %v1399_v51 = vmul.f32 0.7978846, %v1397_v49  ;;  %v1392_v5 = vmul.f32 %v1389_v50, %v1389_v50 }
 0x556   : > { %2499 = vtanh.f32 %v1399_v51  ;;  %v1394_v54 = vmul.f32 %v1392_v5, %v1389_v50  ;;  %v1490_v51 = vperm.slane %v2829_v19, 5 }
 0x558   : > { %v1396_v55 = vmul.f32 0.044715, %v1394_v54 }
 0x55a   : > { %v1398_v56 = vadd.f32 %v1396_v55, %v1389_v50 }
 0x55c   : > { %v2500_v57 = vpop.eup %2499  ;;  %v1400_v6 = vmul.f32 0.7978846, %v1398_v56 }
 0x55d   : > { %v1403_v58 = vadd.f32 1.0, %v2500_v57 }
 0x55e   : > { %2501 = vtanh.f32 %v1400_v6 }
 0x55f   : > { %v1405_v59 = vmul.f32 0.5, %v1403_v58 }
 0x561   : > { %v1407_v60 = vmul.f32 %v1405_v59, %v1386_v43 }
 0x563   : > { %2370 = vmatmul.msk.f32.vlgmr.msra.gmra.mxu2 %vm901_vm3, %v1407_v60 }
 0x564   : > { %v2502_v61 = vpop.eup %2501 }
 0x565   : > { %v1404_v63 = vadd.f32 1.0, %v2502_v61 }
 0x567   : > { %v1406_v2 = vmul.f32 0.5, %v1404_v63 }
 0x569   : > { %v1408_v3 = vmul.f32 %v1406_v2, %v1389_v50 }
 0x56b   : > { %2371 = vmatmul.msk.f32.gmra.mxu2 %vm901_vm3, %v1408_v3 }
 0x5e6   : > { %v1435_v8 = vpop.f32.mrf.mxu2 }
 0x5e7   : > { %v1436_v9 = vadd.f32 %v1435_v8, %v1411_v4 }
 0x5e9   : > { %v1441_v11 = vadd.f32 %v1436_v9, %v1358_v33 }
 0x5eb   : > { %v1443_v12 = vsel %vm588_vm0, %v1441_v11, 0.0 }
 0x5ec   : > { %1444 = vadd.xlane.f32.xlu0 %v1443_v12 }
 0x5ee   : > { %v1438_v14 = vpop.f32.mrf.mxu2 }
 0x5ef   : > { %v1439_v15 = vadd.f32 %v1438_v14, %v1411_v4 }
 0x5f1   : > { %v1442_v16 = vadd.f32 %v1439_v15, %v1359_v38 }
 0x5f3   : > { %v1446_v17 = vsel %vm588_vm0, %v1442_v16, 0.0 }
 0x5f4   : > { %1447 = vadd.xlane.f32.xlu1 %v1446_v17 }
 0x65f   : > { %v1445_v20 = vpop.xlane.xlu0 %1444 }
 0x660   : > { %v1449_v21 = vmul.f32 %v1445_v20, %v2815_v53 }
 0x662   : > { %v1451_v23 = vsub.f32 %v1441_v11, %v1449_v21 }
 0x664   : > { %v1453_v24 = vmul.f32 %v1451_v23, %v1451_v23 }
 0x666   : > { %v1455_v25 = vsel %vm588_vm0, %v1453_v24, 0.0 }
 0x667   : > { %1456 = vadd.xlane.f32.xlu2 %v1455_v25  ;;  %v1448_v26 = vpop.xlane.xlu1 %1447 }
 0x668   : > { %v1450_v27 = vmul.f32 %v1448_v26, %v2815_v53 }
 0x66a   : > { %v1452_v28 = vsub.f32 %v1442_v16, %v1450_v27 }
 0x66c   : > { %v1454_v29 = vmul.f32 %v1452_v28, %v1452_v28 }
 0x66e   : > { %v1458_v30 = vsel %vm588_vm0, %v1454_v29, 0.0 }
 0x66f   : > { %1459 = vadd.xlane.f32.xlu0 %v1458_v30 }
 0x6da   : > { %v1457_v32 = vpop.xlane.xlu2 %1456 }
 0x6db   : > { %v1461_v33 = vmul.f32 %v1457_v32, %v2815_v53 }
 0x6dd   : > { %v1463_v34 = vadd.f32 1e-05, %v1461_v33 }
 0x6df   : > { %2503 = vrsqrt.f32 %v1463_v34  ;;  %vm1471_vm12 = vweird.f32 %v1463_v34 }
 0x6e2   : > { %v1460_v35 = vpop.xlane.xlu0 %1459 }
 0x6e3   : > { %v1462_v36 = vmul.f32 %v1460_v35, %v2815_v53 }
 0x6e5   : > { %v2504_v37 = vpop.eup %2503  ;;  %v1464_v38 = vadd.f32 1e-05, %v1462_v36  ;;  %v2373_v36 = vld [vmem:[%s3010_s11 + $0x8] sm:$0xff] }
 0x6e6   : > { %v1466_v39 = vmul.f32 %v2504_v37, %v1463_v34  ;;  %vm1472_vm11 = vweird.f32 %v2504_v37 }
 0x6e7   : > { %2505 = vrsqrt.f32 %v1464_v38  ;;  %vm1473_vm13 = vmor %vm1471_vm12, %vm1472_vm11  ;;  %vm1481_vm15 = vweird.f32 %v1464_v38 }
 0x6e8   : > { %v1467_v40 = vmul.f32 %v2504_v37, %v1466_v39 }
 0x6ea   : > { %v1468_v41 = vmul.f32 0.5, %v1467_v40 }
 0x6ec   : > { %v1469_v42 = vsub.f32 1.5, %v1468_v41 }
 0x6ed   : > { %v2506_v43 = vpop.eup %2505 }
 0x6ee   : > { %v1470_v44 = vmul.f32 %v2504_v37, %v1469_v42  ;;  %v1476_v45 = vmul.f32 %v2506_v43, %v1464_v38  ;;  %vm1482_vm14 = vweird.f32 %v2506_v43  ;;  %v1818_v38 = vrot.slane %v2373_v36, 4 }
 0x6ef   : > { %vm1483_vm4 = vmor %vm1481_vm15, %vm1482_vm14 }
 0x6f0   : > { %v1474_v47 = vsel %vm1473_vm13, %v2504_v37, %v1470_v44  ;;  %v1477_v49 = vmul.f32 %v2506_v43, %v1476_v45  ;;  %v1679_v37 = vrot.slane %v2373_v36, 2 }
 0x6f1   : > { %v1485_v50 = vmul.f32 %v1474_v47, %v1451_v23 }
 0x6f2   : > { %v1478_v5 = vmul.f32 0.5, %v1477_v49 }
 0x6f3   : > { %v1488_v54 = vmul.f32 %v1487_v46, %v1485_v50 }
 0x6f4   : > { %v1479_v55 = vsub.f32 1.5, %v1478_v5 }
 0x6f5   : > { %v2858_v56 = vadd.f32 %v1490_v51, %v1488_v54 }
 0x6f6   : > { %v1480_v57 = vmul.f32 %v2506_v43, %v1479_v55 }
 0x6f7   : > { %2375 = vmatmul.msk.f32.vlgmr.msra.gmra.mxu3 %vm588_vm0, %v2858_v56 }
 0x6f8   : > { %v1484_v6 = vsel %vm1483_vm4, %v2506_v43, %v1480_v57  ;;  %v1928_v43 = vrot.slane %v2373_v36, 6  ;;  %vm2190_vm4 = vcmask 7168  }
 0x6f9   : > { %v1486_v58 = vmul.f32 %v1484_v6, %v1452_v28 }
 0x6fb   : > { %v1489_v59 = vmul.f32 %v1487_v46, %v1486_v58 }
 0x6fd   : > { %v2862_v60 = vadd.f32 %v1490_v51, %v1489_v59 }
 0x6ff   : > { %2376 = vmatmul.msk.f32.gmra.mxu3 %vm588_vm0, %v2862_v60 }
 0x77a   : > { %v1522_v19 = vpop.f32.mrf.mxu3 }
 0x77b   : > { %1530 = vrot.lane.b32.xlu2 %v1522_v19, %s2529_s17 }
 0x782   : > { %v1525_v61 = vpop.f32.mrf.mxu3 }
 0x783   : > { %1602 = vrot.lane.b32.xlu2 %v1522_v19, %s2528_s0  ;;  %1532 = vrot.lane.b32.xlu1 %v1525_v61, %s2529_s17  ;;  %v2469_v63 = vpack.i.bf16 %v1522_v19, %v1525_v61  ;;  %s3023_s17 = smov 110  }
 0x785   : > { %2470 = vrot.lane.b32.xlu0 %v2469_v63, %s2530_s18 }
 0x78b   : > { %1858 = vrot.lane.b32.xlu2 %v1525_v61, %s2532_s20  ;;  %1608 = vrot.lane.b32.xlu1 %v1525_v61, %s2527_s30 }
 0x78d   : > { %1606 = vrot.lane.b32.xlu0 %v1522_v19, %s2527_s30  ;;  %s3024_s30 = smov 106  }
 0x793   : > { %1742 = vrot.lane.b32.xlu2 %v1522_v19, %s2533_s24  ;;  %1604 = vrot.lane.b32.xlu1 %v1525_v61, %s2528_s0 }
 0x795   : > { %1748 = vrot.lane.b32.xlu0 %v1525_v61, %s2531_s19 }
 0x79b   : > { %1854 = vrot.lane.b32.xlu2 %v1525_v61, %s2534_s25  ;;  %1746 = vrot.lane.b32.xlu1 %v1522_v19, %s2531_s19 }
 0x79d   : > { %1856 = vrot.lane.b32.xlu0 %v1522_v19, %s2532_s20 }
 0x7a3   : > { %2485 = vrot.lane.b32.xlu2 %v2469_v63, %s2535_s23  ;;  %1852 = vrot.lane.b32.xlu1 %v1522_v19, %s2534_s25 }
 0x7a5   : > { %1744 = vrot.lane.b32.xlu0 %v1525_v61, %s2533_s24 }
 0x7ab   : > { %2475 = vrot.lane.b32.xlu1 %v2469_v63, %s3023_s17 }
 0x7ad   : > { %2480 = vrot.lane.b32.xlu0 %v2469_v63, %s3024_s30 }
 0x7d5   : > { %v1531_v2 = vpop.permute.xlu2 %1530 }
 0x7dd   : > { %v1603_v4 = vpop.permute.xlu2 %1602 }
 0x7e5   : > { %v1859_v15 = vpop.permute.xlu2 %1858 }
 0x7ed   : > { %v1743_v20 = vpop.permute.xlu2 %1742 }
 0x7f5   : > { %v1533_v3 = vpop.permute.xlu1 %1532  ;;  %v1855_v24 = vpop.permute.xlu2 %1854 }
 0x7f6   : > { %2377 = vmatpush.xpose.msk.msrb.mxu0 %vm859_vm1, %v1533_v3 }
 0x7f7   : > { %v2471_v8 = vpop.permute.xlu0 %2470 }
 0x7f8   : > { %v2472_v9 = vunpack.i.l.bf16 %v2471_v8  ;;  %v2473_v11 = vunpack.i.h.bf16 %v2471_v8 }
 0x7fa   : > { %2378 = vmatpush.xpose.msk.msrb.mxu0 %vm859_vm1, %v1531_v2  ;;  %1593 = vmatpush.msrb.mxu1 %v2472_v9 }
 0x7fc   : > { %1594 = vmatpush.msrb.mxu1 %v2473_v11 }
 0x7fd   : > { %2379 = vmatmul.msk.f32.vlgmr.msrb.gmra.mxu0 %vm859_vm1, %v1522_v19  ;;  %v1609_v12 = vpop.permute.xlu1 %1608  ;;  %v2486_v28 = vpop.permute.xlu2 %2485 }
 0x7fe   : > { %2383 = vmatpush.xpose.msk.msrb.mxu2 %vm859_vm1, %v1609_v12  ;;  %v2487_v33 = vunpack.i.l.bf16 %v2486_v28  ;;  %v2488_v35 = vunpack.i.h.bf16 %v2486_v28  ;;  %2392 = vmatpush.msk.msra.mxu1 %vm1018_vm2, %v2373_v36 }
 0x7ff   : > { %v1607_v14 = vpop.permute.xlu0 %1606  ;;  %2389 = vmatpush.msk.msra.mxu0 %vm1018_vm2, %v1679_v37 }
 0x801   : > { %2401 = vmatpush.msk.msrb.mxu0 %vm1018_vm2, %v1818_v38 }
 0x802   : > { %2384 = vmatpush.xpose.msk.msrb.mxu2 %vm859_vm1, %v1607_v14 }
 0x805   : > { %2380 = vmatmul.msk.f32.gmra.mxu0 %vm859_vm1, %v1525_v61  ;;  %2385 = vmatmul.msk.f32.vlgmr.msrb.gmra.mxu2 %vm859_vm1, %v1603_v4  ;;  %v1605_v16 = vpop.permute.xlu1 %1604 }
 0x807   : > { %v1749_v17 = vpop.permute.xlu0 %1748 }
 0x808   : > { %2395 = vmatpush.xpose.msk.msra.mxu2 %vm859_vm1, %v1749_v17 }
 0x80d   : > { %2386 = vmatmul.msk.f32.gmra.mxu2 %vm859_vm1, %v1605_v16  ;;  %v1747_v21 = vpop.permute.xlu1 %1746 }
 0x80e   : > { %2396 = vmatpush.xpose.msk.msra.mxu2 %vm859_vm1, %v1747_v21 }
 0x80f   : > { %v1857_v23 = vpop.permute.xlu0 %1856 }
 0x815   : > { %2397 = vmatmul.msk.f32.vlgmr.msra.gmra.mxu2 %vm859_vm1, %v1743_v20  ;;  %v1853_v25 = vpop.permute.xlu1 %1852 }
 0x817   : > { %v1745_v26 = vpop.permute.xlu0 %1744 }
 0x81d   : > { %2398 = vmatmul.msk.f32.gmra.mxu2 %vm859_vm1, %v1745_v26  ;;  %v2476_v27 = vpop.permute.xlu1 %2475 }
 0x81e   : > { %v2477_v29 = vunpack.i.l.bf16 %v2476_v27  ;;  %v2478_v31 = vunpack.i.h.bf16 %v2476_v27 }
 0x81f   : > { %v2481_v30 = vpop.permute.xlu0 %2480 }
 0x820   : > { %v2482_v32 = vunpack.i.l.bf16 %v2481_v30  ;;  %1669 = vmatpush.msrb.mxu3 %v2477_v29  ;;  %v2483_v34 = vunpack.i.h.bf16 %v2481_v30  ;;  %v2491_v29 = vld [vmem:[%s3006_s7 + $0x1] ss:$0 sm:$0xff] }
 0x822   : > { %1670 = vmatpush.msrb.mxu3 %v2478_v31  ;;  %1919 = vmatpush.msrb.mxu2 %v2482_v32  ;;  %v689_v31 = vadd.f32 %v2491_v29, %v2755_v62 }
 0x824   : > { %1809 = vmatpush.msra.mxu3 %v2487_v33  ;;  %1920 = vmatpush.msrb.mxu2 %v2483_v34  ;;  %v691_v33 = vmax.f32 %v689_v31, 0.0 }
 0x826   : > { %1810 = vmatpush.msra.mxu3 %v2488_v35  ;;  %v797_v34 = vsel %vm588_vm0, %v691_v33, 0.0  ;;  %v2413_v35 = vld [vmem:[%s3011_s12 + $0x8] sm:$0xff] }
 0x87a   : > { %v1559_v39 = vpop.f32.mrf.mxu0 }
 0x87b   : > { %v1565_v40 = vmul.f32 %v1559_v39, %v2729_v48 }
 0x87d   : > { %2381 = vmatmul.msk.f32.vlgmr.msrb.gmra.mxu1 %vm901_vm3, %v1565_v40 }
 0x87e   : > { %2404 = vmatpush.xpose.msk.msrb.mxu1 %vm859_vm1, %v1859_v15 }
 0x882   : > { %2405 = vmatpush.xpose.msk.msrb.mxu1 %vm859_vm1, %v1857_v23  ;;  %v1562_v41 = vpop.f32.mrf.mxu0 }
 0x883   : > { %v1566_v42 = vmul.f32 %v1562_v41, %v2737_v52 }
 0x885   : > { %2382 = vmatmul.msk.f32.gmra.mxu1 %vm901_vm3, %v1566_v42 }
 0x888   : > { %v1635_v44 = vpop.f32.mrf.mxu2 }
 0x889   : > { %v1641_v45 = vmul.f32 %v2764_v1, %v1635_v44 }
 0x88b   : > { %2387 = vmatmul.msk.f32.vlgmr.msrb.gmra.mxu3 %vm901_vm3, %v1641_v45 }
 0x88c   : > { %2410 = vmatpush.msk.msrb.mxu3 %vm1018_vm2, %v1928_v43 }
 0x890   : > { %v1638_v48 = vpop.f32.mrf.mxu2 }
 0x891   : > { %v1642_v46 = vmul.f32 %v2773_v7, %v1638_v48 }
 0x893   : > { %2388 = vmatmul.msk.f32.gmra.mxu3 %vm901_vm3, %v1642_v46  ;;  %v2952_v46 = vld [vmem:[%s3013_s14 + $0x8] sm:$0xff] }
 0x898   : > { %v1775_v47 = vpop.f32.mrf.mxu2 }
 0x899   : > { %v1781_v49 = vmul.f32 %v2780_v10, %v1775_v47 }
 0x89b   : > { %2399 = vmatmul.msk.f32.vlgmr.msra.gmra.mxu3 %vm901_vm3, %v1781_v49 }
 0x8a0   : > { %v1778_v52 = vpop.f32.mrf.mxu2 }
 0x8a1   : > { %v1782_v50 = vmul.f32 %v2787_v13, %v1778_v52 }
 0x8a3   : > { %2400 = vmatmul.msk.f32.gmra.mxu3 %vm901_vm3, %v1782_v50 }
 0x8fa   : > { %v1596_v1 = vpop.f32.mrf.mxu1 }
 0x8fb   : > { %2393 = vmatmul.msk.f32.vlgmr.msra.gmra.mxu1 %vm859_vm1, %v1596_v1 }
 0x902   : > { %v1599_v51 = vpop.f32.mrf.mxu1 }
 0x903   : > { %2394 = vmatmul.msk.f32.gmra.mxu1 %vm859_vm1, %v1599_v51  ;;  %v2008_v51 = vperm.slane %v2952_v46, 0 }
 0x90b   : > { %2406 = vmatmul.msk.f32.vlgmr.msrb.gmra.mxu1 %vm859_vm1, %v1853_v25 }
 0x90e   : > { %v1672_v7 = vpop.f32.mrf.mxu3 }
 0x90f   : > { %2390 = vmatmul.msk.f32.vlgmr.msra.gmra.mxu0 %vm859_vm1, %v1672_v7 }
 0x910   : > { %2038 = vmatpush.msra.mxu0 %v2413_v35  ;;  %v2067_v35 = vperm.slane %v2952_v46, 3 }
 0x913   : > { %2407 = vmatmul.msk.f32.gmra.mxu1 %vm859_vm1, %v1855_v24 }
 0x916   : > { %v1675_v10 = vpop.f32.mrf.mxu3 }
 0x917   : > { %2391 = vmatmul.msk.f32.gmra.mxu0 %vm859_vm1, %v1675_v10 }
 0x91e   : > { %v1812_v5 = vpop.f32.mrf.mxu3 }
 0x91f   : > { %2402 = vmatmul.msk.f32.vlgmr.msrb.gmra.mxu0 %vm859_vm1, %v1812_v5 }
 0x926   : > { %v1815_v13 = vpop.f32.mrf.mxu3 }
 0x927   : > { %2403 = vmatmul.msk.f32.gmra.mxu0 %vm859_vm1, %v1815_v13 }
 0x978   : > { %v1736_v54 = vpop.f32.mrf.mxu1 }
 0x980   : > { %v1739_v55 = vpop.f32.mrf.mxu1 }
 0x988   : > { %v1885_v57 = vpop.f32.mrf.mxu1 }
 0x989   : > { %v1891_v6 = vmul.f32 %v2794_v18, %v1885_v57 }
 0x98b   : > { %2408 = vmatmul.msk.f32.vlgmr.msrb.gmra.mxu2 %vm901_vm3, %v1891_v6 }
 0x98c   : > { %v1705_v63 = vpop.f32.mrf.mxu0 }
 0x98d   : > { %v1737_v4 = vadd.f32 %v1736_v54, %v1705_v63 }
 0x990   : > { %v1888_v58 = vpop.f32.mrf.mxu1 }
 0x991   : > { %v1892_v59 = vmul.f32 %v2802_v22, %v1888_v58 }
 0x993   : > { %2409 = vmatmul.msk.f32.gmra.mxu2 %vm901_vm3, %v1892_v59 }
 0x994   : > { %v1708_v2 = vpop.f32.mrf.mxu0 }
 0x995   : > { %v1740_v14 = vadd.f32 %v1739_v55, %v1708_v2  ;;  %v2011_v55 = vperm.slane %v2952_v46, 1 }
 0x99c   : > { %v1844_v3 = vpop.f32.mrf.mxu0 }
 0x99d   : > { %v1850_v8 = vadd.f32 %v1844_v3, %v1737_v4 }
 0x9a4   : > { %v1847_v12 = vpop.f32.mrf.mxu0 }
 0x9a5   : > { %v1851_v15 = vadd.f32 %v1847_v12, %v1740_v14 }
 0xa0e   : > { %v1922_v19 = vpop.f32.mrf.mxu2 }
 0xa0f   : > { %2411 = vmatmul.msk.f32.vlgmr.msrb.gmra.mxu3 %vm859_vm1, %v1922_v19 }
 0xa16   : > { %v1925_v61 = vpop.f32.mrf.mxu2 }
 0xa17   : > { %2412 = vmatmul.msk.f32.gmra.mxu3 %vm859_vm1, %v1925_v61 }
 0xa92   : > { %v1954_v9 = vpop.f32.mrf.mxu3 }
 0xa93   : > { %v1960_v18 = vadd.f32 %v1954_v9, %v1850_v8  ;;  %v2417_v9 = vld [vmem:[%s3012_s13 + $0x18] sm:$0xff] }
 0xa94   : > { %2088 = vmatpush.msra.mxu1 %v2417_v9 }
 0xa95   : > { %v1962_v11 = vadd.f32 %v1960_v18, %v2858_v56  ;;  %v2416_v18 = vld [vmem:[%s3012_s13 + $0x10] sm:$0xff] }
 0xa96   : > { %2089 = vmatpush.msra.mxu1 %v2416_v18 }
 0xa97   : > { %v1964_v22 = vsel %vm588_vm0, %v1962_v11, 0.0 }
 0xa98   : > { %1965 = vadd.xlane.f32.xlu1 %v1964_v22 }
 0xa9a   : > { %v1957_v16 = vpop.f32.mrf.mxu3 }
 0xa9b   : > { %v1961_v17 = vadd.f32 %v1957_v16, %v1851_v15 }
 0xa9d   : > { %v1963_v20 = vadd.f32 %v1961_v17, %v2862_v60 }
 0xa9f   : > { %v1967_v21 = vsel %vm588_vm0, %v1963_v20, 0.0 }
 0xaa0   : > { %1968 = vadd.xlane.f32.xlu0 %v1967_v21 }
 0xb0b   : > { %v1966_v23 = vpop.xlane.xlu1 %1965 }
 0xb0c   : > { %v1970_v24 = vmul.f32 %v1966_v23, %v2815_v53 }
 0xb0e   : > { %v1972_v25 = vsub.f32 %v1962_v11, %v1970_v24  ;;  %v2016_v11 = vperm.slane %v2952_v46, 2 }
 0xb10   : > { %v1974_v26 = vmul.f32 %v1972_v25, %v1972_v25 }
 0xb12   : > { %v1976_v56 = vsel %vm588_vm0, %v1974_v26, 0.0 }
 0xb13   : > { %1977 = vadd.xlane.f32.xlu2 %v1976_v56  ;;  %v1969_v27 = vpop.xlane.xlu0 %1968 }
 0xb14   : > { %v1971_v28 = vmul.f32 %v1969_v27, %v2815_v53 }
 0xb16   : > { %v1973_v30 = vsub.f32 %v1963_v20, %v1971_v28 }
 0xb18   : > { %v1975_v60 = vmul.f32 %v1973_v30, %v1973_v30 }
 0xb1a   : > { %v1979_v32 = vsel %vm588_vm0, %v1975_v60, 0.0 }
 0xb1b   : > { %1980 = vadd.xlane.f32.xlu1 %v1979_v32 }
 0xb23   : > { %798 = vadd.xlane.f32.xlu1 %v797_v34 }
 0xb86   : > { %v1978_v36 = vpop.xlane.xlu2 %1977 }
 0xb87   : > { %v1982_v37 = vmul.f32 %v1978_v36, %v2815_v53 }
 0xb89   : > { %v1984_v38 = vadd.f32 1e-05, %v1982_v37  ;;  %v2492_v37 = vld [vmem:[%s3008_s9 + $0x1] ss:$0 sm:$0xff] }
 0xb8b   : > { %2507 = vrsqrt.f32 %v1984_v38  ;;  %vm1992_vm5 = vweird.f32 %v1984_v38 }
 0xb8e   : > { %v1981_v39 = vpop.xlane.xlu1 %1980 }
 0xb8f   : > { %v1983_v62 = vmul.f32 %v1981_v39, %v2815_v53 }
 0xb91   : > { %v2508_v40 = vpop.eup %2507  ;;  %v1985_v41 = vadd.f32 1e-05, %v1983_v62  ;;  %v794_v62 = vadd.f32 %v2492_v37, %v2758_v0 }
 0xb92   : > { %v1987_v42 = vmul.f32 %v2508_v40, %v1984_v38  ;;  %vm1993_vm2 = vweird.f32 %v2508_v40 }
 0xb93   : > { %2509 = vrsqrt.f32 %v1985_v41  ;;  %vm1994_vm6 = vmor %vm1992_vm5, %vm1993_vm2  ;;  %vm2002_vm8 = vweird.f32 %v1985_v41 }
 0xb94   : > { %v1988_v43 = vmul.f32 %v2508_v40, %v1987_v42  ;;  %v796_v42 = vmax.f32 %v794_v62, 0.0 }
 0xb96   : > { %v1989_v44 = vmul.f32 0.5, %v1988_v43  ;;  %v799_v45 = vpop.xlane.xlu1 %798 }
 0xb97   : > { %v800_v48 = vrot.slane %v799_v45, 4 }
 0xb98   : > { %v1990_v47 = vsub.f32 1.5, %v1989_v44 }
 0xb99   : > { %v2510_v49 = vpop.eup %2509  ;;  %v801_v52 = vadd.f32 %v800_v48, %v799_v45  ;;  %v808_v45 = vsel %vm588_vm0, %v796_v42, 0.0 }
 0xb9a   : > { %v1991_v50 = vmul.f32 %v2508_v40, %v1990_v47  ;;  %v1997_v1 = vmul.f32 %v2510_v49, %v1985_v41  ;;  %vm2003_vm7 = vweird.f32 %v2510_v49 }
 0xb9b   : > { %v802_v7 = vrot.slane %v801_v52, 2  ;;  %vm2004_vm9 = vmor %vm2002_vm8, %vm2003_vm7 }
 0xb9c   : > { %v1995_v10 = vsel %vm1994_vm6, %v2508_v40, %v1991_v50  ;;  %v1998_v5 = vmul.f32 %v2510_v49, %v1997_v1 }
 0xb9d   : > { %v2006_v13 = vmul.f32 %v1995_v10, %v1972_v25  ;;  %v803_v54 = vadd.f32 %v802_v7, %v801_v52 }
 0xb9e   : > { %v1999_v57 = vmul.f32 0.5, %v1998_v5 }
 0xb9f   : > { %v2009_v6 = vmul.f32 %v2008_v51, %v2006_v13  ;;  %v804_v58 = vrot.slane %v803_v54, 1 }
 0xba0   : > { %v2000_v59 = vsub.f32 1.5, %v1999_v57 }
 0xba1   : > { %v805_v19 = vadd.f32 %v804_v58, %v803_v54  ;;  %v2012_v61 = vadd.f32 %v2011_v55, %v2009_v6 }
 0xba2   : > { %v2001_v63 = vmul.f32 %v2510_v49, %v2000_v59 }
 0xba3   : > { %2423 = vpush %v805_v19  ;;  %2414 = vmatmul.msk.f32.vlgmr.msra.gmra.mxu0 %vm588_vm0, %v2012_v61 }
 0xba4   : > { %v2005_v2 = vsel %vm2004_vm9, %v2510_v49, %v2001_v63 }
 0xba5   : > { %v2007_v3 = vmul.f32 %v2005_v2, %v1973_v30 }
 0xba7   : > { %v2010_v4 = vmul.f32 %v2008_v51, %v2007_v3 }
 0xba9   : > { %v2013_v8 = vadd.f32 %v2011_v55, %v2010_v4 }
 0xbab   : > { %2415 = vmatmul.msk.f32.gmra.mxu0 %vm588_vm0, %v2013_v8 }
 0xbd4   : > { %s2424_s30 = spop %2423 }
 0xbd5   : > { %s807_s19 = smul.f32 0.125, %s2424_s30 }
 0xc20   : > { %v2040_v12 = vpop.f32.mrf.mxu0 }
 0xc21   : > { %v2041_v14 = vadd.f32 %v2040_v12, %v2016_v11 }
 0xc23   : > { %v2046_v22 = vmul.f32 %v2041_v14, %v2041_v14 }
 0xc25   : > { %v2048_v15 = vmul.f32 %v2046_v22, %v2041_v14 }
 0xc27   : > { %v2050_v16 = vmul.f32 0.044715, %v2048_v15 }
 0xc28   : > { %v2043_v17 = vpop.f32.mrf.mxu0 }
 0xc29   : > { %v2052_v20 = vadd.f32 %v2050_v16, %v2041_v14  ;;  %v2044_v21 = vadd.f32 %v2043_v17, %v2016_v11  ;;  %v2143_v16 = vperm.slane %v2952_v46, 4 }
 0xc2b   : > { %v2054_v23 = vmul.f32 0.7978846, %v2052_v20  ;;  %v2047_v24 = vmul.f32 %v2044_v21, %v2044_v21 }
 0xc2d   : > { %2511 = vtanh.f32 %v2054_v23  ;;  %v2049_v25 = vmul.f32 %v2047_v24, %v2044_v21  ;;  %v2146_v23 = vperm.slane %v2952_v46, 5 }
 0xc2f   : > { %v2051_v26 = vmul.f32 0.044715, %v2049_v25 }
 0xc31   : > { %v2053_v56 = vadd.f32 %v2051_v26, %v2044_v21 }
 0xc33   : > { %v2512_v27 = vpop.eup %2511  ;;  %v2055_v28 = vmul.f32 0.7978846, %v2053_v56 }
 0xc34   : > { %v2058_v29 = vadd.f32 1.0, %v2512_v27 }
 0xc35   : > { %2513 = vtanh.f32 %v2055_v28 }
 0xc36   : > { %v2060_v30 = vmul.f32 0.5, %v2058_v29 }
 0xc38   : > { %v2062_v60 = vmul.f32 %v2060_v30, %v2041_v14 }
 0xc3a   : > { %2418 = vmatmul.msk.f32.vlgmr.msra.gmra.mxu1 %vm901_vm3, %v2062_v60 }
 0xc3b   : > { %v2514_v31 = vpop.eup %2513 }
 0xc3c   : > { %v2059_v32 = vadd.f32 1.0, %v2514_v31 }
 0xc3e   : > { %v2061_v33 = vmul.f32 0.5, %v2059_v32 }
 0xc40   : > { %v2063_v34 = vmul.f32 %v2061_v33, %v2044_v21  ;;  %v2157_v33 = vld [vmem:[%s3014_s15] sm:$0xff] }
 0xc42   : > { %2419 = vmatmul.msk.f32.gmra.mxu1 %vm901_vm3, %v2063_v34 }
 0xcb7   : > { %v2091_v36 = vpop.f32.mrf.mxu1 }
 0xcb8   : > { %v2092_v38 = vadd.f32 %v2091_v36, %v2067_v35 }
 0xcba   : > { %v2097_v39 = vadd.f32 %v2092_v38, %v2012_v61 }
 0xcbc   : > { %v2099_v40 = vsel %vm588_vm0, %v2097_v39, 0.0 }
 0xcbd   : > { %2100 = vadd.xlane.f32.xlu0 %v2099_v40  ;;  %v2169_v40 = vperm.slane %v2157_v33, 2 }
 0xcbf   : > { %v2094_v41 = vpop.f32.mrf.mxu1 }
 0xcc0   : > { %v2095_v43 = vadd.f32 %v2094_v41, %v2067_v35  ;;  %v2158_v35 = vstv %s807_s19 }
 0xcc1   : > { %v2159_v37 = vmul.f32 %v2158_v35, %v2157_v33 }
 0xcc2   : > { %v2098_v44 = vadd.f32 %v2095_v43, %v2013_v8 }
 0xcc4   : > { %v2102_v48 = vsel %vm588_vm0, %v2098_v44, 0.0 }
 0xcc5   : > { %809 = vadd.xlane.f32.xlu0 %v808_v45  ;;  %2103 = vadd.xlane.f32.xlu2 %v2102_v48 }
 0xd30   : > { %v2101_v47 = vpop.xlane.xlu0 %2100 }
 0xd31   : > { %v2105_v49 = vmul.f32 %v2101_v47, %v2815_v53 }
 0xd33   : > { %v2107_v52 = vsub.f32 %v2097_v39, %v2105_v49 }
 0xd35   : > { %v2109_v50 = vmul.f32 %v2107_v52, %v2107_v52 }
 0xd37   : > { %v2111_v0 = vsel %vm588_vm0, %v2109_v50, 0.0 }
 0xd38   : > { %v2104_v1 = vpop.xlane.xlu2 %2103  ;;  %2112 = vadd.xlane.f32.xlu2 %v2111_v0  ;;  %v810_v51 = vpop.xlane.xlu0 %809 }
 0xd39   : > { %v2106_v7 = vmul.f32 %v2104_v1, %v2815_v53  ;;  %v811_v10 = vrot.slane %v810_v51, 4 }
 0xd3b   : > { %v2108_v5 = vsub.f32 %v2098_v44, %v2106_v7  ;;  %v812_v13 = vadd.f32 %v811_v10, %v810_v51  ;;  %v2178_v44 = vperm.slane %v2157_v33, 3 }
 0xd3d   : > { %v813_v54 = vrot.slane %v812_v13, 2  ;;  %v2110_v55 = vmul.f32 %v2108_v5, %v2108_v5 }
 0xd3f   : > { %v2114_v57 = vsel %vm588_vm0, %v2110_v55, 0.0  ;;  %v814_v6 = vadd.f32 %v813_v54, %v812_v13  ;;  %v2187_v13 = vperm.slane %v2157_v33, 4 }
 0xd40   : > { %2115 = vadd.xlane.f32.xlu1 %v2114_v57 }
 0xd41   : > { %v815_v58 = vrot.slane %v814_v6, 1 }
 0xd43   : > { %v816_v59 = vadd.f32 %v815_v58, %v814_v6 }
 0xd45   : > { %2425 = vpush %v816_v59 }
 0xd76   : > { %s2426_s0 = spop %2425 }
 0xd77   : > { %s818_s18 = smul.f32 0.125, %s2426_s0 }
 0xd79   : > { %v2160_v46 = vstv %s818_s18 }
 0xd7a   : > { %v2161_v34 = vmul.f32 %v2160_v46, %v2157_v33 }
 0xd7c   : > { %v2163_v36 = vrot.slane %v2161_v34, 1 }
 0xd7e   : > { %v2165_v38 = vadd.f32 %v2163_v36, %v2159_v37 }
 0xd80   : > { %v2166_v62 = vperm.slane %v2165_v38, 0 }
 0xdab   : > { %v2113_v19 = vpop.xlane.xlu2 %2112 }
 0xdac   : > { %v2117_v61 = vmul.f32 %v2113_v19, %v2815_v53 }
 0xdae   : > { %v2119_v63 = vadd.f32 1e-05, %v2117_v61 }
 0xdb0   : > { %2515 = vrsqrt.f32 %v2119_v63  ;;  %vm2127_vm10 = vweird.f32 %v2119_v63 }
 0xdb3   : > { %v2116_v2 = vpop.xlane.xlu1 %2115 }
 0xdb4   : > { %v2118_v3 = vmul.f32 %v2116_v2, %v2815_v53 }
 0xdb6   : > { %v2516_v4 = vpop.eup %2515  ;;  %v2120_v8 = vadd.f32 1e-05, %v2118_v3 }
 0xdb7   : > { %v2122_v9 = vmul.f32 %v2516_v4, %v2119_v63  ;;  %vm2128_vm3 = vweird.f32 %v2516_v4 }
 0xdb8   : > { %2517 = vrsqrt.f32 %v2120_v8  ;;  %vm2129_vm11 = vmor %vm2127_vm10, %vm2128_vm3  ;;  %vm2137_vm13 = vweird.f32 %v2120_v8 }
 0xdb9   : > { %v2123_v18 = vmul.f32 %v2516_v4, %v2122_v9 }
 0xdbb   : > { %v2124_v11 = vmul.f32 0.5, %v2123_v18 }
 0xdbd   : > { %v2125_v12 = vsub.f32 1.5, %v2124_v11 }
 0xdbe   : > { %v2518_v14 = vpop.eup %2517 }
 0xdbf   : > { %v2126_v22 = vmul.f32 %v2516_v4, %v2125_v12  ;;  %v2132_v15 = vmul.f32 %v2518_v14, %v2120_v8  ;;  %vm2138_vm12 = vweird.f32 %v2518_v14 }
 0xdc0   : > { %vm2139_vm14 = vmor %vm2137_vm13, %vm2138_vm12 }
 0xdc1   : > { %v2133_v17 = vmul.f32 %v2518_v14, %v2132_v15  ;;  %v2130_v20 = vsel %vm2129_vm11, %v2516_v4, %v2126_v22 }
 0xdc2   : > { %v2141_v21 = vmul.f32 %v2130_v20, %v2107_v52 }
 0xdc3   : > { %v2134_v24 = vmul.f32 0.5, %v2133_v17 }
 0xdc4   : > { %v2144_v25 = vmul.f32 %v2143_v16, %v2141_v21 }
 0xdc5   : > { %v2135_v26 = vsub.f32 1.5, %v2134_v24 }
 0xdc6   : > { %v2147_v56 = vadd.f32 %v2146_v23, %v2144_v25 }
 0xdc7   : > { %v2136_v27 = vmul.f32 %v2518_v14, %v2135_v26 }
 0xdc8   : > { %v2149_v28 = vsel %vm588_vm0, %v2147_v56, 0.0 }
 0xdc9   : > { %2150 = vadd.xlane.f32.xlu0 %v2149_v28  ;;  %v2140_v29 = vsel %vm2139_vm14, %v2518_v14, %v2136_v27 }
 0xdca   : > { %v2142_v30 = vmul.f32 %v2140_v29, %v2108_v5 }
 0xdcc   : > { %v2145_v60 = vmul.f32 %v2143_v16, %v2142_v30 }
 0xdce   : > { %v2148_v31 = vadd.f32 %v2146_v23, %v2145_v60 }
 0xdd0   : > { %v2152_v32 = vsel %vm588_vm0, %v2148_v31, 0.0 }
 0xdd1   : > { %2153 = vadd.xlane.f32.xlu2 %v2152_v32 }
 0xe3c   : > { %v2151_v39 = vpop.xlane.xlu0 %2150 }
 0xe3d   : > { %v2155_v41 = vmul.f32 %v2151_v39, %v2815_v53 }
 0xe3f   : > { %v2167_v42 = vmul.f32 %v2166_v62, %v2155_v41 }
 0xe41   : > { %v2170_v43 = vadd.f32 %v2169_v40, %v2167_v42 }
 0xe43   : > { %vm2172_vm0 = vcmp.gt.f32.partialorder %v2170_v43, 0.0  ;;  %v2174_v45 = vmul.f32 0.01, %v2170_v43 }
 0xe44   : > { %v2154_v48 = vpop.xlane.xlu2 %2153 }
 0xe45   : > { %v2156_v47 = vmul.f32 %v2154_v48, %v2815_v53  ;;  %v2176_v49 = vsel %vm2172_vm0, %v2170_v43, %v2174_v45 }
 0xe46   : > { %v2179_v52 = vmul.f32 %v2178_v44, %v2176_v49 }
 0xe47   : > { %v2168_v50 = vmul.f32 %v2166_v62, %v2156_v47 }
 0xe48   : > { %v2181_v0 = vsel %vm859_vm1, %v2179_v52, 0.0 }
 0xe49   : > { %v2171_v1 = vadd.f32 %v2169_v40, %v2168_v50  ;;  %2182 = vadd.xlane.f32.xlu1 %v2181_v0 }
 0xe4b   : > { %vm2173_vm15 = vcmp.gt.f32.partialorder %v2171_v1, 0.0  ;;  %v2175_v51 = vmul.f32 0.01, %v2171_v1 }
 0xe4d   : > { %v2177_v7 = vsel %vm2173_vm15, %v2171_v1, %v2175_v51 }
 0xe4e   : > { %v2180_v10 = vmul.f32 %v2178_v44, %v2177_v7 }
 0xe50   : > { %v2184_v5 = vsel %vm859_vm1, %v2180_v10, 0.0  ;;  %vm2204_vm1 = vcmask 0  }
 0xe51   : > { %2185 = vadd.xlane.f32.xlu0 %v2184_v5 }
 0xebc   : > { %v2183_v54 = vpop.xlane.xlu1 %2182 }
 0xebd   : > { %v2188_v55 = vadd.f32 %v2187_v13, %v2183_v54 }
 0xebf   : > { %v2191_v6 = vsel %vm2190_vm4, %v2188_v55, 0.0 }
 0xec4   : > { %v2186_v57 = vpop.xlane.xlu0 %2185 }
 0xec5   : > { %v2189_v53 = vadd.f32 %v2187_v13, %v2186_v57 }
 0xec7   : > { %v2192_v58 = vsel %vm2190_vm4, %v2189_v53, 0.0 }
 0xec8   : > { %v2193_v59 = vadd.f32 %v2192_v58, %v2191_v6 }
 0xeca   : > { %2194 = vadd.xlane.f32.xlu2 %v2193_v59 }
 0xf3d   : > { %v2195_v19 = vpop.xlane.xlu2 %2194 }
 0xf3e   : > { %v2196_v61 = vrot.slane %v2195_v19, 4 }
 0xf40   : > { %v2197_v63 = vadd.f32 %v2196_v61, %v2195_v19 }
 0xf42   : > { %v2198_v2 = vrot.slane %v2197_v63, 2 }
 0xf44   : > { %v2199_v3 = vadd.f32 %v2198_v2, %v2197_v63 }
 0xf46   : > { %v2200_v4 = vrot.slane %v2199_v3, 1 }
 0xf48   : > { %v2201_v8 = vadd.f32 %v2200_v4, %v2199_v3 }
 0xf4a   : > { %2427 = vpush %v2201_v8 }
 0xf7b   : > { %s2428_s27 = spop %2427 }
 0xf7c   : > { %v2203_v9 = vstv %s2428_s27 }
 0xf7d   : > { %2205 = vst.msk [vmem:[%s585_s26] sm:$0x1] %vm2204_vm1, %v2203_v9 }
 0xf7e PF: > { %s3026_s29 = sld [smem:[#allocation2_spill]] }
 0xf84   : > { %s26_s21 = sadd.s32 1, %s3026_s29  }
 0xf85   : > { %p23_p4 = scmp.ge.s32.totalorder %s26_s21, 4  }
 0xf87   :  { %25 = sbr.rel (!%p23_p4) target bundleno = 3 (0x3), region = 138 }

</bundles_post_ra>
